<compile_context>
chip_gen: v5e
topology: v5e:2x2
jax: 0.10.0
libtpu: 0.0.40
codegen_flags: <defaults>
</compile_context>

<pallas_src>
import functools

import jax
import jax.numpy as jnp
from jax.experimental import pallas as pl
from jax.experimental.pallas import tpu as pltpu


def _round_up(x, m):
    return (x + m - 1) // m * m


def _pick_row_tile(n_rows, target=512):
    tm = min(target, _round_up(n_rows, 8))
    padded = _round_up(n_rows, tm)
    return tm, padded


# --------------------------------------------------------------------------
# 1) Linear: y = x @ W + b   (weights resident; used for the 4 projections)
# --------------------------------------------------------------------------
def _linear_kernel(x_ref, w_ref, b_ref, o_ref):
    y = jnp.dot(x_ref[...], w_ref[...], preferred_element_type=jnp.float32)
    o_ref[...] = (y + b_ref[...]).astype(o_ref.dtype)


def linear(x2d, w, b, *, tm_target=512):
    n_rows, d_in = x2d.shape
    d_out = w.shape[1]
    tm, padded = _pick_row_tile(n_rows, tm_target)
    if padded != n_rows:
        x2d = jnp.pad(x2d, ((0, padded - n_rows), (0, 0)))
    cost = pl.CostEstimate(
        flops=2 * padded * d_in * d_out,
        transcendentals=0,
        bytes_accessed=4 * (padded * d_in + d_in * d_out + padded * d_out),
    )
    out = pl.pallas_call(
        _linear_kernel,
        out_shape=jax.ShapeDtypeStruct((padded, d_out), x2d.dtype),
        grid_spec=pltpu.PrefetchScalarGridSpec(
            num_scalar_prefetch=0,
            grid=(padded // tm,),
            in_specs=[
                pl.BlockSpec((tm, d_in), lambda i: (i, 0)),
                pl.BlockSpec((d_in, d_out), lambda i: (0, 0)),
                pl.BlockSpec((1, d_out), lambda i: (0, 0)),
            ],
            out_specs=pl.BlockSpec((tm, d_out), lambda i: (i, 0)),
        ),
        compiler_params=pltpu.CompilerParams(dimension_semantics=("parallel",)),
        cost_estimate=cost,
    )(x2d, w, b.reshape(1, d_out))
    return out[:n_rows]


# --------------------------------------------------------------------------
# 2) Scaled dot-product attention per (batch, head)
# --------------------------------------------------------------------------
def _attention_kernel(q_ref, k_ref, v_ref, m_ref, o_ref, *, inv_temperature):
    q = q_ref[...][0, 0]           # (Lq, Dh)
    k = k_ref[...][0, 0]           # (Lk, Dh)
    v = v_ref[...][0, 0]           # (Lk, Dh)
    m = m_ref[...][0]              # (Lq, Lk)  1.0 == masked
    s = jax.lax.dot_general(
        q, k, (((1,), (1,)), ((), ())), preferred_element_type=jnp.float32
    ) * inv_temperature
    s = jnp.where(m > 0.5, -1e30, s)
    s = s - jnp.max(s, axis=-1, keepdims=True)
    p = jnp.exp(s)
    p = p / jnp.sum(p, axis=-1, keepdims=True)
    # TODO(synk): attention dropout omitted (eval-mode identity).
    out = jnp.dot(p.astype(v.dtype), v, preferred_element_type=jnp.float32)
    o_ref[...] = out[None, None].astype(o_ref.dtype)


def attention_core(qh, kh, vh, mask, *, temperature):
    # qh/kh/vh: (B, H, L, Dh); mask: (B, L, L) bool, True == masked.
    B, H, Lq, Dh = qh.shape
    Lk = kh.shape[2]
    mask_f = mask.astype(jnp.float32)
    return pl.pallas_call(
        functools.partial(_attention_kernel, inv_temperature=1.0 / temperature),
        out_shape=jax.ShapeDtypeStruct((B, H, Lq, Dh), qh.dtype),
        grid_spec=pltpu.PrefetchScalarGridSpec(
            num_scalar_prefetch=0,
            grid=(B, H),
            in_specs=[
                pl.BlockSpec((1, 1, Lq, Dh), lambda b, h: (b, h, 0, 0)),
                pl.BlockSpec((1, 1, Lk, Dh), lambda b, h: (b, h, 0, 0)),
                pl.BlockSpec((1, 1, Lk, Dh), lambda b, h: (b, h, 0, 0)),
                pl.BlockSpec((1, Lq, Lk), lambda b, h: (b, 0, 0)),
            ],
            out_specs=pl.BlockSpec((1, 1, Lq, Dh), lambda b, h: (b, h, 0, 0)),
        ),
        compiler_params=pltpu.CompilerParams(
            dimension_semantics=("parallel", "parallel")),
    )(qh, kh, vh, mask_f)


# --------------------------------------------------------------------------
# 3) Residual add + LayerNorm
# --------------------------------------------------------------------------
def _add_ln_kernel(x_ref, y_ref, g_ref, b_ref, o_ref, *, eps):
    s = x_ref[...].astype(jnp.float32) + y_ref[...].astype(jnp.float32)
    mu = jnp.mean(s, axis=-1, keepdims=True)
    var = jnp.mean(jnp.square(s - mu), axis=-1, keepdims=True)
    inv = jax.lax.rsqrt(var + eps)
    o_ref[...] = ((s - mu) * inv * g_ref[...] + b_ref[...]).astype(o_ref.dtype)


def add_layer_norm(x2d, y2d, gamma, beta, *, eps=1e-5, tm_target=512):
    n_rows, d = x2d.shape
    tm, padded = _pick_row_tile(n_rows, tm_target)
    if padded != n_rows:
        x2d = jnp.pad(x2d, ((0, padded - n_rows), (0, 0)))
        y2d = jnp.pad(y2d, ((0, padded - n_rows), (0, 0)))
    out = pl.pallas_call(
        functools.partial(_add_ln_kernel, eps=eps),
        out_shape=jax.ShapeDtypeStruct((padded, d), x2d.dtype),
        grid_spec=pltpu.PrefetchScalarGridSpec(
            num_scalar_prefetch=0,
            grid=(padded // tm,),
            in_specs=[
                pl.BlockSpec((tm, d), lambda i: (i, 0)),
                pl.BlockSpec((tm, d), lambda i: (i, 0)),
                pl.BlockSpec((1, d), lambda i: (0, 0)),
                pl.BlockSpec((1, d), lambda i: (0, 0)),
            ],
            out_specs=pl.BlockSpec((tm, d), lambda i: (i, 0)),
        ),
        compiler_params=pltpu.CompilerParams(dimension_semantics=("parallel",)),
    )(x2d, y2d, gamma.reshape(1, d), beta.reshape(1, d))
    return out[:n_rows]


# --------------------------------------------------------------------------
# 4) Position-wise FFN: dim_ff streamed, f32 VMEM accumulator
# --------------------------------------------------------------------------
def _ffn_kernel(x_ref, w1_ref, b1_ref, w2_ref, b2_ref, o_ref, acc_ref):
    k = pl.program_id(1)

    @pl.when(k == 0)
    def _():
        acc_ref[...] = jnp.zeros_like(acc_ref)

    h = jnp.dot(x_ref[...], w1_ref[...], preferred_element_type=jnp.float32)
    h = jnp.maximum(h + b1_ref[...], 0.0)                       # ReLU(Linear1)
    acc_ref[...] += jnp.dot(h.astype(w2_ref.dtype), w2_ref[...],
                            preferred_element_type=jnp.float32)

    @pl.when(k == pl.num_programs(1) - 1)
    def _():
        y = acc_ref[...] + b2_ref[...]
        # Second ReLU matches this module's nn.Sequential (Linear2 -> ReLU).
        o_ref[...] = jnp.maximum(y, 0.0).astype(o_ref.dtype)


def position_wise_ffn(x2d, w1, b1, w2, b2, *, tm_target=512, tk_target=512):
    n_rows, d_model = x2d.shape
    d_ff = w1.shape[1]
    tm, padded = _pick_row_tile(n_rows, tm_target)
    if padded != n_rows:
        x2d = jnp.pad(x2d, ((0, padded - n_rows), (0, 0)))

    # dim_ff streaming tile: largest lane-aligned divisor <= tk_target.
    tk = d_ff
    if d_ff > tk_target:
        for cand in (512, 384, 256, 128):
            if cand <= tk_target and d_ff % cand == 0:
                tk = cand
                break
    nk = d_ff // tk

    cost = pl.CostEstimate(
        flops=4 * padded * d_model * d_ff,
        transcendentals=0,
        bytes_accessed=4 * (2 * padded * d_model + 2 * d_model * d_ff + d_ff + d_model),
    )
    out = pl.pallas_call(
        _ffn_kernel,
        out_shape=jax.ShapeDtypeStruct((padded, d_model), x2d.dtype),
        grid_spec=pltpu.PrefetchScalarGridSpec(
            num_scalar_prefetch=0,
            grid=(padded // tm, nk),
            in_specs=[
                pl.BlockSpec((tm, d_model), lambda i, k: (i, 0)),   # x tile
                pl.BlockSpec((d_model, tk), lambda i, k: (0, k)),   # W1 col-tile
                pl.BlockSpec((1, tk), lambda i, k: (0, k)),         # b1 tile
                pl.BlockSpec((tk, d_model), lambda i, k: (k, 0)),   # W2 row-tile
                pl.BlockSpec((1, d_model), lambda i, k: (0, 0)),    # b2
            ],
            out_specs=pl.BlockSpec((tm, d_model), lambda i, k: (i, 0)),
            scratch_shapes=[pltpu.VMEM((tm, d_model), jnp.float32)],
        ),
        compiler_params=pltpu.CompilerParams(
            dimension_semantics=("parallel", "arbitrary")),
        cost_estimate=cost,
    )(x2d, w1, b1.reshape(1, d_ff), w2, b2.reshape(1, d_model))
    return out[:n_rows]


# --------------------------------------------------------------------------
# Encoder layer / full encoder
# --------------------------------------------------------------------------
def encoder_layer(x, mask, p, *, num_heads):
    B, L, D = x.shape
    Dh = D // num_heads
    x2d = x.reshape(B * L, D)

    q = linear(x2d, p["wq"], p["bq"])
    k = linear(x2d, p["wk"], p["bk"])
    v = linear(x2d, p["wv"], p["bv"])

    qh = q.reshape(B, L, num_heads, Dh).transpose(0, 2, 1, 3)
    kh = k.reshape(B, L, num_heads, Dh).transpose(0, 2, 1, 3)
    vh = v.reshape(B, L, num_heads, Dh).transpose(0, 2, 1, 3)

    attn = attention_core(qh, kh, vh, mask, temperature=float(D) ** 0.5)
    attn2d = attn.transpose(0, 2, 1, 3).reshape(B * L, D)
    attn_out = linear(attn2d, p["wo"], p["bo"])

    h = add_layer_norm(x2d, attn_out, p["ln1_g"], p["ln1_b"])    # attention_norm(attn + x)
    ff = position_wise_ffn(h, p["w1"], p["b1"], p["w2"], p["b2"])
    out = add_layer_norm(h, ff, p["ln2_g"], p["ln2_b"])          # feedforward_norm(ff + out)
    return out.reshape(B, L, D)


@functools.partial(jax.jit, static_argnames=("num_heads",))
def transformer_encoder(tokens, mask, embedding, layer_params, *, num_heads):
    # TODO(synk): embedding lookup is a data-dependent gather; kept in plain JAX
    # (a Pallas version would need a manual-DMA gather with scalar prefetch).
    x = jnp.take(embedding, tokens, axis=0)
    for p in layer_params:
        x = encoder_layer(x, mask, p, num_heads=num_heads)
    return x


# --------------------------------------------------------------------------
# Pure-JAX reference for the self-test
# --------------------------------------------------------------------------
def _reference(tokens, mask, embedding, layer_params, num_heads):
    def layernorm(z, g, b):
        mu = jnp.mean(z, axis=-1, keepdims=True)
        var = jnp.mean((z - mu) ** 2, axis=-1, keepdims=True)
        return (z - mu) * jax.lax.rsqrt(var + 1e-5) * g + b

    x = jnp.take(embedding, tokens, axis=0)
    for p in layer_params:
        B, L, D = x.shape
        Dh = D // num_heads
        q = (x @ p["wq"] + p["bq"]).reshape(B, L, num_heads, Dh).transpose(0, 2, 1, 3)
        k = (x @ p["wk"] + p["bk"]).reshape(B, L, num_heads, Dh).transpose(0, 2, 1, 3)
        v = (x @ p["wv"] + p["bv"]).reshape(B, L, num_heads, Dh).transpose(0, 2, 1, 3)
        s = jnp.einsum("bhqd,bhkd->bhqk", q, k) / (float(D) ** 0.5)
        s = jnp.where(mask[:, None, :, :], -1e30, s)
        probs = jax.nn.softmax(s, axis=-1)
        a = jnp.einsum("bhqk,bhkd->bhqd", probs, v)
        a = a.transpose(0, 2, 1, 3).reshape(B, L, D)
        a = a @ p["wo"] + p["bo"]
        h = layernorm(a + x, p["ln1_g"], p["ln1_b"])
        ff = jnp.maximum(h @ p["w1"] + p["b1"], 0.0)
        ff = jnp.maximum(ff @ p["w2"] + p["b2"], 0.0)
        x = layernorm(ff + h, p["ln2_g"], p["ln2_b"])
    return x


# --------------------------------------------------------------------------
if __name__ == "__main__":
    num_layers = 2
    dim_model = 128          # lane-dense feature dim
    num_heads = 4            # dim_head = 32
    dim_ff = 1024            # exercises the dim_ff streaming axis (2 k-tiles)
    vocab_size = 64
    batch, seq = 2, 16

    key = jax.random.PRNGKey(0)
    k_emb, k_tok, k_layers = jax.random.split(key, 3)

    embedding = 0.1 * jax.random.normal(k_emb, (vocab_size, dim_model), jnp.float32)
    tokens = jax.random.randint(k_tok, (batch, seq), 0, vocab_size)

    # Padding-style mask: True == masked-out key position.
    lengths = jnp.array([seq, 12])
    key_mask = jnp.arange(seq)[None, None, :] >= lengths[:, None, None]  # (B,1,L)
    mask = jnp.broadcast_to(key_mask, (batch, seq, seq))

    def init_layer(kk):
        ks = jax.random.split(kk, 16)
        s_in = 1.0 / (dim_model ** 0.5)
        s_ff = 1.0 / (dim_ff ** 0.5)
        n = jax.random.normal
        return {
            "wq": n(ks[0], (dim_model, dim_model), jnp.float32) * s_in,
            "bq": n(ks[1], (dim_model,), jnp.float32) * 0.02,
            "wk": n(ks[2], (dim_model, dim_model), jnp.float32) * s_in,
            "bk": n(ks[3], (dim_model,), jnp.float32) * 0.02,
            "wv": n(ks[4], (dim_model, dim_model), jnp.float32) * s_in,
            "bv": n(ks[5], (dim_model,), jnp.float32) * 0.02,
            "wo": n(ks[6], (dim_model, dim_model), jnp.float32) * s_in,
            "bo": n(ks[7], (dim_model,), jnp.float32) * 0.02,
            "w1": n(ks[8], (dim_model, dim_ff), jnp.float32) * s_in,
            "b1": n(ks[9], (dim_ff,), jnp.float32) * 0.02,
            "w2": n(ks[10], (dim_ff, dim_model), jnp.float32) * s_ff,
            "b2": n(ks[11], (dim_model,), jnp.float32) * 0.02,
            "ln1_g": 1.0 + 0.05 * n(ks[12], (dim_model,), jnp.float32),
            "ln1_b": 0.05 * n(ks[13], (dim_model,), jnp.float32),
            "ln2_g": 1.0 + 0.05 * n(ks[14], (dim_model,), jnp.float32),
            "ln2_b": 0.05 * n(ks[15], (dim_model,), jnp.float32),
        }

    layer_params = [init_layer(kk) for kk in jax.random.split(k_layers, num_layers)]

    out = transformer_encoder(tokens, mask, embedding, layer_params,
                              num_heads=num_heads)
    out = jax.block_until_ready(out)

    ref = _reference(tokens, mask, embedding, layer_params, num_heads)
    assert out.shape == (batch, seq, dim_model) and out.dtype == jnp.float32
    max_err = float(jnp.max(jnp.abs(out - ref)))
    assert jnp.allclose(out, ref, atol=2e-2, rtol=2e-2), f"max abs err {max_err}"

    print("KERNEL_OK")
</pallas_src>

<mosaic_0001>
module attributes {stable_mosaic.version = 11 : i64} {
  func.func @_linear_kernel(%arg0: i32, %arg1: memref<32x128xf32, #tpu.memory_space<vmem>>, %arg2: memref<128x128xf32, #tpu.memory_space<vmem>>, %arg3: memref<1x128xf32, #tpu.memory_space<vmem>>, %arg4: memref<32x128xf32, #tpu.memory_space<vmem>>) attributes {dimension_semantics = [#tpu.dimension_semantics<parallel>], iteration_bounds = array<i64: 1>, scalar_prefetch = 0 : i64, scratch_operands = 0 : i64, tpu.core_type = #tpu.core_type<tc>, window_params = [{transform_indices = @transform_0, window_bounds = array<i64: 32, 128>}, {pipeline_mode = #tpu.pipeline_mode<synchronous>, transform_indices = @transform_1, window_bounds = array<i64: 128, 128>}, {pipeline_mode = #tpu.pipeline_mode<synchronous>, transform_indices = @transform_2, window_bounds = array<i64: 1, 128>}, {transform_indices = @transform_3, window_bounds = array<i64: 32, 128>}]} {
    %c0 = arith.constant 0 : index
    %c0_0 = arith.constant 0 : index
    %0 = vector.load %arg1[%c0, %c0_0] : memref<32x128xf32, #tpu.memory_space<vmem>>, vector<32x128xf32>
    %c0_1 = arith.constant 0 : index
    %c0_2 = arith.constant 0 : index
    %1 = vector.load %arg2[%c0_1, %c0_2] : memref<128x128xf32, #tpu.memory_space<vmem>>, vector<128x128xf32>
    %cst = arith.constant dense<0.000000e+00> : vector<32x128xf32>
    %2 = tpu.matmul %0, %1, %cst {dimension_numbers = #tpu.dot_dimension_numbers<[1], [0], [0], [1], [0, 0, 1, 1], [], []>} : vector<32x128xf32>, vector<128x128xf32>, vector<32x128xf32> -> vector<32x128xf32>
    %c0_3 = arith.constant 0 : index
    %c0_4 = arith.constant 0 : index
    %3 = vector.load %arg3[%c0_3, %c0_4] : memref<1x128xf32, #tpu.memory_space<vmem>>, vector<1x128xf32>
    %4 = vector.broadcast %3 : vector<1x128xf32> to vector<32x128xf32>
    %5 = arith.addf %2, %4 : vector<32x128xf32>
    %c0_5 = arith.constant 0 : index
    %c0_6 = arith.constant 0 : index
    %6 = vector.load %arg4[%c0_5, %c0_6] : memref<32x128xf32, #tpu.memory_space<vmem>>, vector<32x128xf32>
    tpu.vector_store %arg4[%c0_5, %c0_6], %5 {strides = array<i32>} : memref<32x128xf32, #tpu.memory_space<vmem>>, vector<32x128xf32>,
    return
  }
  func.func @transform_0(%arg0: i32) -> (i32, i32) {
    %c0_i32 = arith.constant 0 : i32
    %c0_i32_0 = arith.constant 0 : i32
    return %arg0, %c0_i32 : i32, i32
  }
  func.func @transform_1(%arg0: i32) -> (i32, i32) {
    %c0_i32 = arith.constant 0 : i32
    %c0_i32_0 = arith.constant 0 : i32
    %c0_i32_1 = arith.constant 0 : i32
    return %c0_i32, %c0_i32_0 : i32, i32
  }
  func.func @transform_2(%arg0: i32) -> (i32, i32) {
    %c0_i32 = arith.constant 0 : i32
    %c0_i32_0 = arith.constant 0 : i32
    %c0_i32_1 = arith.constant 0 : i32
    return %c0_i32, %c0_i32_0 : i32, i32
  }
  func.func @transform_3(%arg0: i32) -> (i32, i32) {
    %c0_i32 = arith.constant 0 : i32
    %c0_i32_0 = arith.constant 0 : i32
    return %arg0, %c0_i32 : i32, i32
  }
}

module attributes {stable_mosaic.version = 11 : i64} {
  func.func @_attention_kernel(%arg0: i32, %arg1: i32, %arg2: memref<1x1x16x32xf32, #tpu.memory_space<vmem>>, %arg3: memref<1x1x16x32xf32, #tpu.memory_space<vmem>>, %arg4: memref<1x1x16x32xf32, #tpu.memory_space<vmem>>, %arg5: memref<1x16x16xf32, #tpu.memory_space<vmem>>, %arg6: memref<1x1x16x32xf32, #tpu.memory_space<vmem>>) attributes {dimension_semantics = [#tpu.dimension_semantics<parallel>, #tpu.dimension_semantics<parallel>], iteration_bounds = array<i64: 2, 4>, scalar_prefetch = 0 : i64, scratch_operands = 0 : i64, tpu.core_type = #tpu.core_type<tc>, window_params = [{transform_indices = @transform_0, window_bounds = array<i64: 1, 1, 16, 32>}, {transform_indices = @transform_1, window_bounds = array<i64: 1, 1, 16, 32>}, {transform_indices = @transform_2, window_bounds = array<i64: 1, 1, 16, 32>}, {transform_indices = @transform_3, window_bounds = array<i64: 1, 16, 16>}, {transform_indices = @transform_4, window_bounds = array<i64: 1, 1, 16, 32>}]} {
    %c0 = arith.constant 0 : index
    %c0_0 = arith.constant 0 : index
    %c0_1 = arith.constant 0 : index
    %c0_2 = arith.constant 0 : index
    %0 = vector.load %arg2[%c0, %c0_0, %c0_1, %c0_2] : memref<1x1x16x32xf32, #tpu.memory_space<vmem>>, vector<1x1x16x32xf32>
    %1 = vector.shape_cast %0 : vector<1x1x16x32xf32> to vector<16x32xf32>
    %c0_3 = arith.constant 0 : index
    %c0_4 = arith.constant 0 : index
    %c0_5 = arith.constant 0 : index
    %c0_6 = arith.constant 0 : index
    %2 = vector.load %arg3[%c0_3, %c0_4, %c0_5, %c0_6] : memref<1x1x16x32xf32, #tpu.memory_space<vmem>>, vector<1x1x16x32xf32>
    %3 = vector.shape_cast %2 : vector<1x1x16x32xf32> to vector<16x32xf32>
    %c0_7 = arith.constant 0 : index
    %c0_8 = arith.constant 0 : index
    %c0_9 = arith.constant 0 : index
    %c0_10 = arith.constant 0 : index
    %4 = vector.load %arg4[%c0_7, %c0_8, %c0_9, %c0_10] : memref<1x1x16x32xf32, #tpu.memory_space<vmem>>, vector<1x1x16x32xf32>
    %5 = vector.shape_cast %4 : vector<1x1x16x32xf32> to vector<16x32xf32>
    %c0_11 = arith.constant 0 : index
    %c0_12 = arith.constant 0 : index
    %c0_13 = arith.constant 0 : index
    %6 = vector.load %arg5[%c0_11, %c0_12, %c0_13] : memref<1x16x16xf32, #tpu.memory_space<vmem>>, vector<1x16x16xf32>
    %7 = vector.shape_cast %6 : vector<1x16x16xf32> to vector<16x16xf32>
    %cst = arith.constant dense<0.000000e+00> : vector<16x16xf32>
    %8 = tpu.matmul %1, %3, %cst {dimension_numbers = #tpu.dot_dimension_numbers<[1], [1], [0], [0], [0, 0, 1, 0], [], []>} : vector<16x32xf32>, vector<16x32xf32>, vector<16x16xf32> -> vector<16x16xf32>
    %cst_14 = arith.constant 0.0883883461 : f32
    %9 = vector.broadcast %cst_14 : f32 to vector<16x16xf32>
    %10 = arith.mulf %8, %9 : vector<16x16xf32>
    %cst_15 = arith.constant 5.000000e-01 : f32
    %11 = vector.broadcast %cst_15 : f32 to vector<16x16xf32>
    %12 = arith.cmpf ogt, %7, %11 : vector<16x16xf32>
    %cst_16 = arith.constant -1.000000e+30 : f32
    %13 = vector.broadcast %cst_16 : f32 to vector<16x16xf32>
    %14 = arith.select %12, %13, %10 : vector<16x16xi1>, vector<16x16xf32>
    %cst_17 = arith.constant dense<0xFF800000> : vector<16xf32>
    %15 = vector.multi_reduction <maximumf>, %14, %cst_17 [1] : vector<16x16xf32> to vector<16xf32>
    %16 = vector.shape_cast %15 : vector<16xf32> to vector<16x1xf32>
    %17 = vector.broadcast %16 : vector<16x1xf32> to vector<16x16xf32>
    %18 = arith.subf %14, %17 : vector<16x16xf32>
    %19 = math.exp %18 : vector<16x16xf32>
    %cst_18 = arith.constant dense<0.000000e+00> : vector<16xf32>
    %20 = vector.multi_reduction <add>, %19, %cst_18 [1] : vector<16x16xf32> to vector<16xf32>
    %21 = vector.shape_cast %20 : vector<16xf32> to vector<16x1xf32>
    %22 = vector.broadcast %21 : vector<16x1xf32> to vector<16x16xf32>
    %23 = arith.divf %19, %22 : vector<16x16xf32>
    %cst_19 = arith.constant dense<0.000000e+00> : vector<16x32xf32>
    %24 = tpu.matmul %23, %5, %cst_19 {dimension_numbers = #tpu.dot_dimension_numbers<[1], [0], [0], [1], [0, 0, 1, 1], [], []>} : vector<16x16xf32>, vector<16x32xf32>, vector<16x32xf32> -> vector<16x32xf32>
    %25 = vector.shape_cast %24 : vector<16x32xf32> to vector<1x1x16x32xf32>
    %c0_20 = arith.constant 0 : index
    %c0_21 = arith.constant 0 : index
    %c0_22 = arith.constant 0 : index
    %c0_23 = arith.constant 0 : index
    %26 = vector.load %arg6[%c0_20, %c0_21, %c0_22, %c0_23] : memref<1x1x16x32xf32, #tpu.memory_space<vmem>>, vector<1x1x16x32xf32>
    tpu.vector_store %arg6[%c0_20, %c0_21, %c0_22, %c0_23], %25 {strides = array<i32>} : memref<1x1x16x32xf32, #tpu.memory_space<vmem>>, vector<1x1x16x32xf32>,
    return
  }
  func.func @transform_0(%arg0: i32, %arg1: i32) -> (i32, i32, i32, i32) {
    %c0_i32 = arith.constant 0 : i32
    %c0_i32_0 = arith.constant 0 : i32
    %c0_i32_1 = arith.constant 0 : i32
    return %arg0, %arg1, %c0_i32, %c0_i32_0 : i32, i32, i32, i32
  }
  func.func @transform_1(%arg0: i32, %arg1: i32) -> (i32, i32, i32, i32) {
    %c0_i32 = arith.constant 0 : i32
    %c0_i32_0 = arith.constant 0 : i32
    %c0_i32_1 = arith.constant 0 : i32
    return %arg0, %arg1, %c0_i32, %c0_i32_0 : i32, i32, i32, i32
  }
  func.func @transform_2(%arg0: i32, %arg1: i32) -> (i32, i32, i32, i32) {
    %c0_i32 = arith.constant 0 : i32
    %c0_i32_0 = arith.constant 0 : i32
    %c0_i32_1 = arith.constant 0 : i32
    return %arg0, %arg1, %c0_i32, %c0_i32_0 : i32, i32, i32, i32
  }
  func.func @transform_3(%arg0: i32, %arg1: i32) -> (i32, i32, i32) {
    %c0_i32 = arith.constant 0 : i32
    %c0_i32_0 = arith.constant 0 : i32
    %c0_i32_1 = arith.constant 0 : i32
    return %arg0, %c0_i32, %c0_i32_0 : i32, i32, i32
  }
  func.func @transform_4(%arg0: i32, %arg1: i32) -> (i32, i32, i32, i32) {
    %c0_i32 = arith.constant 0 : i32
    %c0_i32_0 = arith.constant 0 : i32
    %c0_i32_1 = arith.constant 0 : i32
    return %arg0, %arg1, %c0_i32, %c0_i32_0 : i32, i32, i32, i32
  }
}

module attributes {stable_mosaic.version = 11 : i64} {
  func.func @_add_ln_kernel(%arg0: i32, %arg1: memref<32x128xf32, #tpu.memory_space<vmem>>, %arg2: memref<32x128xf32, #tpu.memory_space<vmem>>, %arg3: memref<1x128xf32, #tpu.memory_space<vmem>>, %arg4: memref<1x128xf32, #tpu.memory_space<vmem>>, %arg5: memref<32x128xf32, #tpu.memory_space<vmem>>) attributes {dimension_semantics = [#tpu.dimension_semantics<parallel>], iteration_bounds = array<i64: 1>, scalar_prefetch = 0 : i64, scratch_operands = 0 : i64, tpu.core_type = #tpu.core_type<tc>, window_params = [{transform_indices = @transform_0, window_bounds = array<i64: 32, 128>}, {transform_indices = @transform_1, window_bounds = array<i64: 32, 128>}, {pipeline_mode = #tpu.pipeline_mode<synchronous>, transform_indices = @transform_2, window_bounds = array<i64: 1, 128>}, {pipeline_mode = #tpu.pipeline_mode<synchronous>, transform_indices = @transform_3, window_bounds = array<i64: 1, 128>}, {transform_indices = @transform_4, window_bounds = array<i64: 32, 128>}]} {
    %c0 = arith.constant 0 : index
    %c0_0 = arith.constant 0 : index
    %0 = vector.load %arg1[%c0, %c0_0] : memref<32x128xf32, #tpu.memory_space<vmem>>, vector<32x128xf32>
    %c0_1 = arith.constant 0 : index
    %c0_2 = arith.constant 0 : index
    %1 = vector.load %arg2[%c0_1, %c0_2] : memref<32x128xf32, #tpu.memory_space<vmem>>, vector<32x128xf32>
    %2 = arith.addf %0, %1 : vector<32x128xf32>
    %cst = arith.constant dense<0.000000e+00> : vector<32xf32>
    %3 = vector.multi_reduction <add>, %2, %cst [1] : vector<32x128xf32> to vector<32xf32>
    %4 = vector.shape_cast %3 : vector<32xf32> to vector<32x1xf32>
    %cst_3 = arith.constant 1.280000e+02 : f32
    %5 = vector.broadcast %cst_3 : f32 to vector<32x1xf32>
    %6 = arith.divf %4, %5 : vector<32x1xf32>
    %7 = vector.broadcast %6 : vector<32x1xf32> to vector<32x128xf32>
    %8 = arith.subf %2, %7 : vector<32x128xf32>
    %9 = arith.mulf %8, %8 : vector<32x128xf32>
    %cst_4 = arith.constant dense<0.000000e+00> : vector<32xf32>
    %10 = vector.multi_reduction <add>, %9, %cst_4 [1] : vector<32x128xf32> to vector<32xf32>
    %11 = vector.shape_cast %10 : vector<32xf32> to vector<32x1xf32>
    %cst_5 = arith.constant 1.280000e+02 : f32
    %12 = vector.broadcast %cst_5 : f32 to vector<32x1xf32>
    %13 = arith.divf %11, %12 : vector<32x1xf32>
    %cst_6 = arith.constant 9.99999974E-6 : f32
    %14 = vector.broadcast %cst_6 : f32 to vector<32x1xf32>
    %15 = arith.addf %13, %14 : vector<32x1xf32>
    %16 = math.rsqrt %15 : vector<32x1xf32>
    %17 = vector.broadcast %6 : vector<32x1xf32> to vector<32x128xf32>
    %18 = arith.subf %2, %17 : vector<32x128xf32>
    %19 = vector.broadcast %16 : vector<32x1xf32> to vector<32x128xf32>
    %20 = arith.mulf %18, %19 : vector<32x128xf32>
    %c0_7 = arith.constant 0 : index
    %c0_8 = arith.constant 0 : index
    %21 = vector.load %arg3[%c0_7, %c0_8] : memref<1x128xf32, #tpu.memory_space<vmem>>, vector<1x128xf32>
    %22 = vector.broadcast %21 : vector<1x128xf32> to vector<32x128xf32>
    %23 = arith.mulf %20, %22 : vector<32x128xf32>
    %c0_9 = arith.constant 0 : index
    %c0_10 = arith.constant 0 : index
    %24 = vector.load %arg4[%c0_9, %c0_10] : memref<1x128xf32, #tpu.memory_space<vmem>>, vector<1x128xf32>
    %25 = vector.broadcast %24 : vector<1x128xf32> to vector<32x128xf32>
    %26 = arith.addf %23, %25 : vector<32x128xf32>
    %c0_11 = arith.constant 0 : index
    %c0_12 = arith.constant 0 : index
    %27 = vector.load %arg5[%c0_11, %c0_12] : memref<32x128xf32, #tpu.memory_space<vmem>>, vector<32x128xf32>
    tpu.vector_store %arg5[%c0_11, %c0_12], %26 {strides = array<i32>} : memref<32x128xf32, #tpu.memory_space<vmem>>, vector<32x128xf32>,
    return
  }
  func.func @transform_0(%arg0: i32) -> (i32, i32) {
    %c0_i32 = arith.constant 0 : i32
    %c0_i32_0 = arith.constant 0 : i32
    return %arg0, %c0_i32 : i32, i32
  }
  func.func @transform_1(%arg0: i32) -> (i32, i32) {
    %c0_i32 = arith.constant 0 : i32
    %c0_i32_0 = arith.constant 0 : i32
    return %arg0, %c0_i32 : i32, i32
  }
  func.func @transform_2(%arg0: i32) -> (i32, i32) {
    %c0_i32 = arith.constant 0 : i32
    %c0_i32_0 = arith.constant 0 : i32
    %c0_i32_1 = arith.constant 0 : i32
    return %c0_i32, %c0_i32_0 : i32, i32
  }
  func.func @transform_3(%arg0: i32) -> (i32, i32) {
    %c0_i32 = arith.constant 0 : i32
    %c0_i32_0 = arith.constant 0 : i32
    %c0_i32_1 = arith.constant 0 : i32
    return %c0_i32, %c0_i32_0 : i32, i32
  }
  func.func @transform_4(%arg0: i32) -> (i32, i32) {
    %c0_i32 = arith.constant 0 : i32
    %c0_i32_0 = arith.constant 0 : i32
    return %arg0, %c0_i32 : i32, i32
  }
}

module attributes {stable_mosaic.version = 11 : i64} {
  func.func @_ffn_kernel(%arg0: i32, %arg1: i32, %arg2: memref<32x128xf32, #tpu.memory_space<vmem>>, %arg3: memref<128x512xf32, #tpu.memory_space<vmem>>, %arg4: memref<1x512xf32, #tpu.memory_space<vmem>>, %arg5: memref<512x128xf32, #tpu.memory_space<vmem>>, %arg6: memref<1x128xf32, #tpu.memory_space<vmem>>, %arg7: memref<32x128xf32, #tpu.memory_space<vmem>>, %arg8: memref<32x128xf32, #tpu.memory_space<vmem>>) attributes {dimension_semantics = [#tpu.dimension_semantics<parallel>, #tpu.dimension_semantics<arbitrary>], iteration_bounds = array<i64: 1, 2>, scalar_prefetch = 0 : i64, scratch_operands = 1 : i64, tpu.core_type = #tpu.core_type<tc>, window_params = [{transform_indices = @transform_0, window_bounds = array<i64: 32, 128>}, {transform_indices = @transform_1, window_bounds = array<i64: 128, 512>}, {transform_indices = @transform_2, window_bounds = array<i64: 1, 512>}, {transform_indices = @transform_3, window_bounds = array<i64: 512, 128>}, {pipeline_mode = #tpu.pipeline_mode<synchronous>, transform_indices = @transform_4, window_bounds = array<i64: 1, 128>}, {transform_indices = @transform_5, window_bounds = array<i64: 32, 128>}]} {
    %c0_i32 = arith.constant 0 : i32
    %0 = arith.cmpi eq, %arg1, %c0_i32 : i32
    %1 = arith.extui %0 : i1 to i32
    %c0_i32_0 = arith.constant 0 : i32
    %2 = arith.cmpi ne, %1, %c0_i32_0 : i32
    scf.if %2 {
      %cst_15 = arith.constant 0.000000e+00 : f32
      %19 = vector.broadcast %cst_15 : f32 to vector<32x128xf32>
      %c0_16 = arith.constant 0 : index
      %c0_17 = arith.constant 0 : index
      %20 = vector.load %arg8[%c0_16, %c0_17] : memref<32x128xf32, #tpu.memory_space<vmem>>, vector<32x128xf32>
      tpu.vector_store %arg8[%c0_16, %c0_17], %19 {strides = array<i32>} : memref<32x128xf32, #tpu.memory_space<vmem>>, vector<32x128xf32>,
    } else {
    }
    %c0 = arith.constant 0 : index
    %c0_1 = arith.constant 0 : index
    %3 = vector.load %arg2[%c0, %c0_1] : memref<32x128xf32, #tpu.memory_space<vmem>>, vector<32x128xf32>
    %c0_2 = arith.constant 0 : index
    %c0_3 = arith.constant 0 : index
    %4 = vector.load %arg3[%c0_2, %c0_3] : memref<128x512xf32, #tpu.memory_space<vmem>>, vector<128x512xf32>
    %cst = arith.constant dense<0.000000e+00> : vector<32x512xf32>
    %5 = tpu.matmul %3, %4, %cst {dimension_numbers = #tpu.dot_dimension_numbers<[1], [0], [0], [1], [0, 0, 1, 1], [], []>} : vector<32x128xf32>, vector<128x512xf32>, vector<32x512xf32> -> vector<32x512xf32>
    %c0_4 = arith.constant 0 : index
    %c0_5 = arith.constant 0 : index
    %6 = vector.load %arg4[%c0_4, %c0_5] : memref<1x512xf32, #tpu.memory_space<vmem>>, vector<1x512xf32>
    %7 = vector.broadcast %6 : vector<1x512xf32> to vector<32x512xf32>
    %8 = arith.addf %5, %7 : vector<32x512xf32>
    %cst_6 = arith.constant 0.000000e+00 : f32
    %9 = vector.broadcast %cst_6 : f32 to vector<32x512xf32>
    %10 = arith.maximumf %8, %9 : vector<32x512xf32>
    %c0_7 = arith.constant 0 : index
    %c0_8 = arith.constant 0 : index
    %11 = vector.load %arg8[%c0_7, %c0_8] : memref<32x128xf32, #tpu.memory_space<vmem>>, vector<32x128xf32>
    %c0_9 = arith.constant 0 : index
    %c0_10 = arith.constant 0 : index
    %12 = vector.load %arg5[%c0_9, %c0_10] : memref<512x128xf32, #tpu.memory_space<vmem>>, vector<512x128xf32>
    %cst_11 = arith.constant dense<0.000000e+00> : vector<32x128xf32>
    %13 = tpu.matmul %10, %12, %cst_11 {dimension_numbers = #tpu.dot_dimension_numbers<[1], [0], [0], [1], [0, 0, 1, 1], [], []>} : vector<32x512xf32>, vector<512x128xf32>, vector<32x128xf32> -> vector<32x128xf32>
    %14 = arith.addf %11, %13 : vector<32x128xf32>
    %c0_12 = arith.constant 0 : index
    %c0_13 = arith.constant 0 : index
    %15 = vector.load %arg8[%c0_12, %c0_13] : memref<32x128xf32, #tpu.memory_space<vmem>>, vector<32x128xf32>
    tpu.vector_store %arg8[%c0_12, %c0_13], %14 {strides = array<i32>} : memref<32x128xf32, #tpu.memory_space<vmem>>, vector<32x128xf32>,
    %c1_i32 = arith.constant 1 : i32
    %16 = arith.cmpi eq, %arg1, %c1_i32 : i32
    %17 = arith.extui %16 : i1 to i32
    %c0_i32_14 = arith.constant 0 : i32
    %18 = arith.cmpi ne, %17, %c0_i32_14 : i32
    scf.if %18 {
      %c0_15 = arith.constant 0 : index
      %c0_16 = arith.constant 0 : index
      %19 = vector.load %arg8[%c0_15, %c0_16] : memref<32x128xf32, #tpu.memory_space<vmem>>, vector<32x128xf32>
      %c0_17 = arith.constant 0 : index
      %c0_18 = arith.constant 0 : index
      %20 = vector.load %arg6[%c0_17, %c0_18] : memref<1x128xf32, #tpu.memory_space<vmem>>, vector<1x128xf32>
      %21 = vector.broadcast %20 : vector<1x128xf32> to vector<32x128xf32>
      %22 = arith.addf %19, %21 : vector<32x128xf32>
      %cst_19 = arith.constant 0.000000e+00 : f32
      %23 = vector.broadcast %cst_19 : f32 to vector<32x128xf32>
      %24 = arith.maximumf %22, %23 : vector<32x128xf32>
      %c0_20 = arith.constant 0 : index
      %c0_21 = arith.constant 0 : index
      %25 = vector.load %arg7[%c0_20, %c0_21] : memref<32x128xf32, #tpu.memory_space<vmem>>, vector<32x128xf32>
      tpu.vector_store %arg7[%c0_20, %c0_21], %24 {strides = array<i32>} : memref<32x128xf32, #tpu.memory_space<vmem>>, vector<32x128xf32>,
    } else {
    }
    return
  }
  func.func @transform_0(%arg0: i32, %arg1: i32) -> (i32, i32) {
    %c0_i32 = arith.constant 0 : i32
    %c0_i32_0 = arith.constant 0 : i32
    return %arg0, %c0_i32 : i32, i32
  }
  func.func @transform_1(%arg0: i32, %arg1: i32) -> (i32, i32) {
    %c0_i32 = arith.constant 0 : i32
    %c0_i32_0 = arith.constant 0 : i32
    return %c0_i32, %arg1 : i32, i32
  }
  func.func @transform_2(%arg0: i32, %arg1: i32) -> (i32, i32) {
    %c0_i32 = arith.constant 0 : i32
    %c0_i32_0 = arith.constant 0 : i32
    return %c0_i32, %arg1 : i32, i32
  }
  func.func @transform_3(%arg0: i32, %arg1: i32) -> (i32, i32) {
    %c0_i32 = arith.constant 0 : i32
    %c0_i32_0 = arith.constant 0 : i32
    return %arg1, %c0_i32 : i32, i32
  }
  func.func @transform_4(%arg0: i32, %arg1: i32) -> (i32, i32) {
    %c0_i32 = arith.constant 0 : i32
    %c0_i32_0 = arith.constant 0 : i32
    %c0_i32_1 = arith.constant 0 : i32
    return %c0_i32, %c0_i32_0 : i32, i32
  }
  func.func @transform_5(%arg0: i32, %arg1: i32) -> (i32, i32) {
    %c0_i32 = arith.constant 0 : i32
    %c0_i32_0 = arith.constant 0 : i32
    return %arg0, %c0_i32 : i32, i32
  }
}

module attributes {stable_mosaic.version = 11 : i64} {
  func.func @_add_ln_kernel(%arg0: i32, %arg1: memref<32x128xf32, #tpu.memory_space<vmem>>, %arg2: memref<32x128xf32, #tpu.memory_space<vmem>>, %arg3: memref<1x128xf32, #tpu.memory_space<vmem>>, %arg4: memref<1x128xf32, #tpu.memory_space<vmem>>, %arg5: memref<32x128xf32, #tpu.memory_space<vmem>>) attributes {dimension_semantics = [#tpu.dimension_semantics<parallel>], iteration_bounds = array<i64: 1>, scalar_prefetch = 0 : i64, scratch_operands = 0 : i64, tpu.core_type = #tpu.core_type<tc>, window_params = [{transform_indices = @transform_0, window_bounds = array<i64: 32, 128>}, {transform_indices = @transform_1, window_bounds = array<i64: 32, 128>}, {pipeline_mode = #tpu.pipeline_mode<synchronous>, transform_indices = @transform_2, window_bounds = array<i64: 1, 128>}, {pipeline_mode = #tpu.pipeline_mode<synchronous>, transform_indices = @transform_3, window_bounds = array<i64: 1, 128>}, {transform_indices = @transform_4, window_bounds = array<i64: 32, 128>}]} {
    %c0 = arith.constant 0 : index
    %c0_0 = arith.constant 0 : index
    %0 = vector.load %arg1[%c0, %c0_0] : memref<32x128xf32, #tpu.memory_space<vmem>>, vector<32x128xf32>
    %c0_1 = arith.constant 0 : index
    %c0_2 = arith.constant 0 : index
    %1 = vector.load %arg2[%c0_1, %c0_2] : memref<32x128xf32, #tpu.memory_space<vmem>>, vector<32x128xf32>
    %2 = arith.addf %0, %1 : vector<32x128xf32>
    %cst = arith.constant dense<0.000000e+00> : vector<32xf32>
    %3 = vector.multi_reduction <add>, %2, %cst [1] : vector<32x128xf32> to vector<32xf32>
    %4 = vector.shape_cast %3 : vector<32xf32> to vector<32x1xf32>
    %cst_3 = arith.constant 1.280000e+02 : f32
    %5 = vector.broadcast %cst_3 : f32 to vector<32x1xf32>
    %6 = arith.divf %4, %5 : vector<32x1xf32>
    %7 = vector.broadcast %6 : vector<32x1xf32> to vector<32x128xf32>
    %8 = arith.subf %2, %7 : vector<32x128xf32>
    %9 = arith.mulf %8, %8 : vector<32x128xf32>
    %cst_4 = arith.constant dense<0.000000e+00> : vector<32xf32>
    %10 = vector.multi_reduction <add>, %9, %cst_4 [1] : vector<32x128xf32> to vector<32xf32>
    %11 = vector.shape_cast %10 : vector<32xf32> to vector<32x1xf32>
    %cst_5 = arith.constant 1.280000e+02 : f32
    %12 = vector.broadcast %cst_5 : f32 to vector<32x1xf32>
    %13 = arith.divf %11, %12 : vector<32x1xf32>
    %cst_6 = arith.constant 9.99999974E-6 : f32
    %14 = vector.broadcast %cst_6 : f32 to vector<32x1xf32>
    %15 = arith.addf %13, %14 : vector<32x1xf32>
    %16 = math.rsqrt %15 : vector<32x1xf32>
    %17 = vector.broadcast %6 : vector<32x1xf32> to vector<32x128xf32>
    %18 = arith.subf %2, %17 : vector<32x128xf32>
    %19 = vector.broadcast %16 : vector<32x1xf32> to vector<32x128xf32>
    %20 = arith.mulf %18, %19 : vector<32x128xf32>
    %c0_7 = arith.constant 0 : index
    %c0_8 = arith.constant 0 : index
    %21 = vector.load %arg3[%c0_7, %c0_8] : memref<1x128xf32, #tpu.memory_space<vmem>>, vector<1x128xf32>
    %22 = vector.broadcast %21 : vector<1x128xf32> to vector<32x128xf32>
    %23 = arith.mulf %20, %22 : vector<32x128xf32>
    %c0_9 = arith.constant 0 : index
    %c0_10 = arith.constant 0 : index
    %24 = vector.load %arg4[%c0_9, %c0_10] : memref<1x128xf32, #tpu.memory_space<vmem>>, vector<1x128xf32>
    %25 = vector.broadcast %24 : vector<1x128xf32> to vector<32x128xf32>
    %26 = arith.addf %23, %25 : vector<32x128xf32>
    %c0_11 = arith.constant 0 : index
    %c0_12 = arith.constant 0 : index
    %27 = vector.load %arg5[%c0_11, %c0_12] : memref<32x128xf32, #tpu.memory_space<vmem>>, vector<32x128xf32>
    tpu.vector_store %arg5[%c0_11, %c0_12], %26 {strides = array<i32>} : memref<32x128xf32, #tpu.memory_space<vmem>>, vector<32x128xf32>,
    return
  }
  func.func @transform_0(%arg0: i32) -> (i32, i32) {
    %c0_i32 = arith.constant 0 : i32
    %c0_i32_0 = arith.constant 0 : i32
    return %arg0, %c0_i32 : i32, i32
  }
  func.func @transform_1(%arg0: i32) -> (i32, i32) {
    %c0_i32 = arith.constant 0 : i32
    %c0_i32_0 = arith.constant 0 : i32
    return %arg0, %c0_i32 : i32, i32
  }
  func.func @transform_2(%arg0: i32) -> (i32, i32) {
    %c0_i32 = arith.constant 0 : i32
    %c0_i32_0 = arith.constant 0 : i32
    %c0_i32_1 = arith.constant 0 : i32
    return %c0_i32, %c0_i32_0 : i32, i32
  }
  func.func @transform_3(%arg0: i32) -> (i32, i32) {
    %c0_i32 = arith.constant 0 : i32
    %c0_i32_0 = arith.constant 0 : i32
    %c0_i32_1 = arith.constant 0 : i32
    return %c0_i32, %c0_i32_0 : i32, i32
  }
  func.func @transform_4(%arg0: i32) -> (i32, i32) {
    %c0_i32 = arith.constant 0 : i32
    %c0_i32_0 = arith.constant 0 : i32
    return %arg0, %c0_i32 : i32, i32
  }
}

</mosaic_0001>

<bundles_post_ra>
// kernel: transformer_encoder.18
= control target key start
LH: loop header
LB: loop body
LE: loop exit
PB: predicated region body
PF: predicated region fallthrough
CT: control target
= control target key end

     0   :  { %s219_s1 = inlined_call_operand.vmem [shape: f32[128,128], index: 1, kind: input, shape index: {}]   ;;  %s220_s2 = inlined_call_operand.vmem [shape: f32[1,128], index: 2, kind: input, shape index: {}]   ;;  %s221_s0 = inlined_call_operand.vmem [shape: f32[32,128], index: 0, kind: input, shape index: {}]   ;;  %s222_s3 = inlined_call_operand.vmem [shape: f32[32,128], index: 3, kind: output, shape index: {}]  }
   0x1   :  { %v33_v0 = vld [vmem:[%s219_s1 + $0x78] sm:$0xff]  ;;  %v32_v1 = vld [vmem:[%s219_s1 + $0x70] sm:$0xff]  ;;  %v31_v2 = vld [vmem:[%s219_s1 + $0x68] sm:$0xff] }
   0x2   :  { %76 = vmatpush.msra.mxu2 %v33_v0  ;;  %77 = vmatpush.msra.mxu3 %v33_v0  ;;  %v30_v3 = vld [vmem:[%s219_s1 + $0x60] sm:$0xff]  ;;  %v29_v4 = vld [vmem:[%s219_s1 + $0x58] sm:$0xff]  ;;  %v28_v5 = vld [vmem:[%s219_s1 + $0x50] sm:$0xff] }
   0x3   :  { %38 = vmatpush.msra.mxu0 %v33_v0  ;;  %75 = vmatpush.msra.mxu1 %v33_v0  ;;  %v27_v6 = vld [vmem:[%s219_s1 + $0x48] sm:$0xff]  ;;  %v26_v7 = vld [vmem:[%s219_s1 + $0x40] sm:$0xff]  ;;  %v25_v8 = vld [vmem:[%s219_s1 + $0x38] sm:$0xff] }
   0x4   :  { %79 = vmatpush.msra.mxu2 %v32_v1  ;;  %80 = vmatpush.msra.mxu3 %v32_v1  ;;  %v24_v9 = vld [vmem:[%s219_s1 + $0x30] sm:$0xff]  ;;  %v23_v10 = vld [vmem:[%s219_s1 + $0x28] sm:$0xff]  ;;  %v22_v11 = vld [vmem:[%s219_s1 + $0x20] sm:$0xff] }
   0x5   :  { %39 = vmatpush.msra.mxu0 %v32_v1  ;;  %78 = vmatpush.msra.mxu1 %v32_v1  ;;  %v21_v12 = vld [vmem:[%s219_s1 + $0x18] sm:$0xff]  ;;  %v20_v13 = vld [vmem:[%s219_s1 + $0x10] sm:$0xff]  ;;  %v19_v14 = vld [vmem:[%s219_s1 + $0x8] sm:$0xff] }
   0x6   :  { %82 = vmatpush.msra.mxu2 %v31_v2  ;;  %83 = vmatpush.msra.mxu3 %v31_v2  ;;  %v18_v15 = vld [vmem:[%s219_s1] sm:$0xff]  ;;  %v16_v16 = vld [vmem:[%s221_s0 + $0x10] sm:$0xff]  ;;  %v17_v17 = vld [vmem:[%s221_s0 + $0x18] sm:$0xff] }
   0x7   :  { %40 = vmatpush.msra.mxu0 %v31_v2  ;;  %81 = vmatpush.msra.mxu1 %v31_v2  ;;  %v14_v18 = vld [vmem:[%s221_s0] sm:$0xff]  ;;  %v15_v19 = vld [vmem:[%s221_s0 + $0x8] sm:$0xff] }
   0x8   :  { %85 = vmatpush.msra.mxu2 %v30_v3  ;;  %86 = vmatpush.msra.mxu3 %v30_v3  ;;  %v123_v20 = vld [vmem:[%s220_s2] ss:$0 sm:$0xff] }
   0x9   :  { %41 = vmatpush.msra.mxu0 %v30_v3  ;;  %84 = vmatpush.msra.mxu1 %v30_v3 }
   0xa   :  { %88 = vmatpush.msra.mxu2 %v29_v4  ;;  %89 = vmatpush.msra.mxu3 %v29_v4 }
   0xb   :  { %42 = vmatpush.msra.mxu0 %v29_v4  ;;  %87 = vmatpush.msra.mxu1 %v29_v4 }
   0xc   :  { %91 = vmatpush.msra.mxu2 %v28_v5  ;;  %92 = vmatpush.msra.mxu3 %v28_v5 }
   0xd   :  { %43 = vmatpush.msra.mxu0 %v28_v5  ;;  %90 = vmatpush.msra.mxu1 %v28_v5 }
   0xe   :  { %94 = vmatpush.msra.mxu2 %v27_v6  ;;  %95 = vmatpush.msra.mxu3 %v27_v6 }
   0xf   :  { %44 = vmatpush.msra.mxu0 %v27_v6  ;;  %93 = vmatpush.msra.mxu1 %v27_v6 }
  0x10   :  { %97 = vmatpush.msra.mxu2 %v26_v7  ;;  %98 = vmatpush.msra.mxu3 %v26_v7 }
  0x11   :  { %45 = vmatpush.msra.mxu0 %v26_v7  ;;  %96 = vmatpush.msra.mxu1 %v26_v7 }
  0x12   :  { %100 = vmatpush.msra.mxu2 %v25_v8  ;;  %101 = vmatpush.msra.mxu3 %v25_v8 }
  0x13   :  { %46 = vmatpush.msra.mxu0 %v25_v8  ;;  %99 = vmatpush.msra.mxu1 %v25_v8 }
  0x14   :  { %103 = vmatpush.msra.mxu2 %v24_v9  ;;  %104 = vmatpush.msra.mxu3 %v24_v9 }
  0x15   :  { %47 = vmatpush.msra.mxu0 %v24_v9  ;;  %102 = vmatpush.msra.mxu1 %v24_v9 }
  0x16   :  { %106 = vmatpush.msra.mxu2 %v23_v10  ;;  %107 = vmatpush.msra.mxu3 %v23_v10 }
  0x17   :  { %48 = vmatpush.msra.mxu0 %v23_v10  ;;  %105 = vmatpush.msra.mxu1 %v23_v10 }
  0x18   :  { %109 = vmatpush.msra.mxu2 %v22_v11  ;;  %110 = vmatpush.msra.mxu3 %v22_v11 }
  0x19   :  { %49 = vmatpush.msra.mxu0 %v22_v11  ;;  %108 = vmatpush.msra.mxu1 %v22_v11 }
  0x1a   :  { %112 = vmatpush.msra.mxu2 %v21_v12  ;;  %113 = vmatpush.msra.mxu3 %v21_v12 }
  0x1b   :  { %50 = vmatpush.msra.mxu0 %v21_v12  ;;  %111 = vmatpush.msra.mxu1 %v21_v12 }
  0x1c   :  { %115 = vmatpush.msra.mxu2 %v20_v13  ;;  %116 = vmatpush.msra.mxu3 %v20_v13 }
  0x1d   :  { %51 = vmatpush.msra.mxu0 %v20_v13  ;;  %114 = vmatpush.msra.mxu1 %v20_v13 }
  0x1e   :  { %118 = vmatpush.msra.mxu2 %v19_v14  ;;  %119 = vmatpush.msra.mxu3 %v19_v14 }
  0x1f   :  { %52 = vmatpush.msra.mxu0 %v19_v14  ;;  %117 = vmatpush.msra.mxu1 %v19_v14 }
  0x20   :  { %121 = vmatpush.msra.mxu2 %v18_v15  ;;  %122 = vmatpush.msra.mxu3 %v18_v15 }
  0x21   :  { %60 = vmatmul.f32.vlgmr.msra.gmra.mxu2 %v16_v16  ;;  %63 = vmatmul.f32.vlgmr.msra.gmra.mxu3 %v17_v17 }
  0x22   :  { %53 = vmatpush.msra.mxu0 %v18_v15  ;;  %120 = vmatpush.msra.mxu1 %v18_v15 }
  0x23   :  { %54 = vmatmul.f32.vlgmr.msra.gmra.mxu0 %v14_v18  ;;  %57 = vmatmul.f32.vlgmr.msra.gmra.mxu1 %v15_v19 }
  0xa0   :  { %v55_v21 = vpop.f32.mrf.mxu0  ;;  %v58_v22 = vpop.f32.mrf.mxu1 }
  0xa1   :  { %v56_v23 = vadd.f32 %v123_v20, %v55_v21  ;;  %v59_v24 = vadd.f32 %v123_v20, %v58_v22 }
  0xa3   :  { %67 = vst [vmem:[%s222_s3] sm:$0xff] %v56_v23 }
  0xa4   :  { %68 = vst [vmem:[%s222_s3 + $0x8] sm:$0xff] %v59_v24  ;;  %v61_v25 = vpop.f32.mrf.mxu2  ;;  %v64_v26 = vpop.f32.mrf.mxu3 }
  0xa5   :  { %v62_v27 = vadd.f32 %v123_v20, %v61_v25  ;;  %v65_v28 = vadd.f32 %v123_v20, %v64_v26 }
  0xa7   :  { %69 = vst [vmem:[%s222_s3 + $0x10] sm:$0xff] %v62_v27 }
  0xa8   :  { %70 = vst [vmem:[%s222_s3 + $0x18] sm:$0xff] %v65_v28 }

// kernel: transformer_encoder.21
= control target key start
LH: loop header
LB: loop body
LE: loop exit
PB: predicated region body
PF: predicated region fallthrough
CT: control target
= control target key end

     0   :  { %v153_v12 = vmov 128.0   ;;  %s231_s0 = inlined_call_operand.vmem [shape: f32[32,128], index: 0, kind: input, shape index: {}]   ;;  %s232_s1 = inlined_call_operand.vmem [shape: f32[32,128], index: 1, kind: input, shape index: {}]   ;;  %s233_s2 = inlined_call_operand.vmem [shape: f32[1,128], index: 2, kind: input, shape index: {}]   ;;  %s234_s3 = inlined_call_operand.vmem [shape: f32[1,128], index: 3, kind: input, shape index: {}]   ;;  %s235_s4 = inlined_call_operand.vmem [shape: f32[32,128], index: 4, kind: output, shape index: {}]  }
   0x1   :  { %v19_v0 = vld [vmem:[%s231_s0 + $0x10] sm:$0xff]  ;;  %v17_v2 = vld [vmem:[%s231_s0] sm:$0xff]  ;;  %v20_v6 = vld [vmem:[%s231_s0 + $0x18] sm:$0xff]  ;;  %143 = vrcp.f32 %v153_v12 }
   0x2   :  { %v23_v1 = vld [vmem:[%s232_s1 + $0x10] sm:$0xff]  ;;  %v21_v4 = vld [vmem:[%s232_s1] sm:$0xff]  ;;  %v24_v7 = vld [vmem:[%s232_s1 + $0x18] sm:$0xff] }
   0x3   :  { %v27_v3 = vadd.f32 %v23_v1, %v19_v0  ;;  %v25_v5 = vadd.f32 %v21_v4, %v17_v2  ;;  %v18_v8 = vld [vmem:[%s231_s0 + $0x8] sm:$0xff]  ;;  %v28_v10 = vadd.f32 %v24_v7, %v20_v6  ;;  %v141_v61 = vld [vmem:[%s233_s2] ss:$0 sm:$0xff] }
   0x4   :  { %v22_v9 = vld [vmem:[%s232_s1 + $0x8] sm:$0xff]  ;;  %v142_v2 = vld [vmem:[%s234_s3] ss:$0 sm:$0xff] }
   0x5   :  { %33 = vadd.xlane.f32.xlu1 %v27_v3  ;;  %29 = vadd.xlane.f32.xlu0 %v25_v5  ;;  %v26_v11 = vadd.f32 %v22_v9, %v18_v8 }
   0x7   :  { %v144_v13 = vpop.eup %143 }
   0x8   :  { %v38_v14 = vmul.f32 128.0, %v144_v13  ;;  %vm42_vm0 = vweird.f32 %v144_v13 }
   0xa   :  { %v39_v15 = vsub.f32 1.0, %v38_v14 }
   0xc   :  { %v40_v16 = vmul.f32 %v144_v13, %v39_v15 }
   0xd   :  { %35 = vadd.xlane.f32.xlu1 %v28_v10  ;;  %31 = vadd.xlane.f32.xlu0 %v26_v11 }
   0xe   :  { %v41_v17 = vadd.f32 %v144_v13, %v40_v16 }
  0x10   :  { %v43_v18 = vsel %vm42_vm0, %v144_v13, %v41_v17 }
  0x78   :  { %v34_v19 = vpop.xlane.xlu1 %33  ;;  %v30_v21 = vpop.xlane.xlu0 %29 }
  0x79   :  { %v46_v20 = vmul.f32 %v43_v18, %v34_v19  ;;  %v44_v22 = vmul.f32 %v43_v18, %v30_v21 }
  0x7b   :  { %v50_v23 = vsub.f32 %v27_v3, %v46_v20  ;;  %v48_v24 = vsub.f32 %v25_v5, %v44_v22 }
  0x7d   :  { %v54_v25 = vmul.f32 %v50_v23, %v50_v23  ;;  %v52_v26 = vmul.f32 %v48_v24, %v48_v24 }
  0x7f   :  { %60 = vadd.xlane.f32.xlu0 %v54_v25  ;;  %56 = vadd.xlane.f32.xlu2 %v52_v26 }
  0x80   :  { %v36_v27 = vpop.xlane.xlu1 %35  ;;  %v32_v29 = vpop.xlane.xlu0 %31 }
  0x81   :  { %v47_v28 = vmul.f32 %v43_v18, %v36_v27  ;;  %v45_v30 = vmul.f32 %v43_v18, %v32_v29 }
  0x83   :  { %v203_v31 = vsub.f32 %v28_v10, %v47_v28  ;;  %v205_v32 = vsub.f32 %v26_v11, %v45_v30 }
  0x85   :  { %v55_v33 = vmul.f32 %v203_v31, %v203_v31  ;;  %v53_v34 = vmul.f32 %v205_v32, %v205_v32 }
  0x87   :  { %62 = vadd.xlane.f32.xlu1 %v55_v33  ;;  %58 = vadd.xlane.f32.xlu2 %v53_v34 }
  0xf2   :  { %v61_v35 = vpop.xlane.xlu0 %60  ;;  %v57_v36 = vpop.xlane.xlu2 %56 }
  0xf3   :  { %v66_v37 = vmul.f32 %v61_v35, %v43_v18  ;;  %v64_v38 = vmul.f32 %v57_v36, %v43_v18 }
  0xf5   :  { %v70_v39 = vadd.f32 1e-05, %v66_v37  ;;  %v68_v40 = vadd.f32 1e-05, %v64_v38 }
  0xf7   :  { %145 = vrsqrt.f32 %v70_v39  ;;  %vm98_vm3 = vweird.f32 %v70_v39  ;;  %vm78_vm4 = vweird.f32 %v68_v40 }
  0xf8   :  { %147 = vrsqrt.f32 %v68_v40 }
  0xfa   :  { %v63_v41 = vpop.xlane.xlu1 %62  ;;  %v59_v43 = vpop.xlane.xlu2 %58 }
  0xfb   :  { %v67_v42 = vmul.f32 %v63_v41, %v43_v18  ;;  %v65_v44 = vmul.f32 %v59_v43, %v43_v18 }
  0xfd   :  { %v146_v45 = vpop.eup %145  ;;  %v71_v46 = vadd.f32 1e-05, %v67_v42  ;;  %v69_v49 = vadd.f32 1e-05, %v65_v44 }
  0xfe   :  { %v148_v47 = vpop.eup %147  ;;  %v93_v48 = vmul.f32 %v146_v45, %v70_v39  ;;  %vm99_vm1 = vweird.f32 %v146_v45 }
  0xff   :  { %v73_v50 = vmul.f32 %v148_v47, %v68_v40  ;;  %149 = vrsqrt.f32 %v71_v46  ;;  %vm79_vm2 = vweird.f32 %v148_v47  ;;  %vm100_vm5 = vmor %vm98_vm3, %vm99_vm1  ;;  %vm108_vm9 = vweird.f32 %v71_v46 }
 0x100   :  { %v94_v51 = vmul.f32 %v146_v45, %v93_v48  ;;  %151 = vrsqrt.f32 %v69_v49  ;;  %vm80_vm6 = vmor %vm78_vm4, %vm79_vm2  ;;  %vm88_vm11 = vweird.f32 %v69_v49 }
 0x101   :  { %v74_v52 = vmul.f32 %v148_v47, %v73_v50 }
 0x102   :  { %v95_v53 = vmul.f32 0.5, %v94_v51 }
 0x103   :  { %v75_v54 = vmul.f32 0.5, %v74_v52 }
 0x104   :  { %v96_v55 = vsub.f32 1.5, %v95_v53 }
 0x105   :  { %v150_v56 = vpop.eup %149  ;;  %v76_v57 = vsub.f32 1.5, %v75_v54 }
 0x106   :  { %v152_v58 = vpop.eup %151  ;;  %v97_v59 = vmul.f32 %v146_v45, %v96_v55  ;;  %v103_v60 = vmul.f32 %v150_v56, %v71_v46  ;;  %vm109_vm7 = vweird.f32 %v150_v56 }
 0x107   :  { %v77_v62 = vmul.f32 %v148_v47, %v76_v57  ;;  %v83_v63 = vmul.f32 %v152_v58, %v69_v49  ;;  %vm89_vm8 = vweird.f32 %v152_v58  ;;  %vm110_vm10 = vmor %vm108_vm9, %vm109_vm7 }
 0x108   :  { %v101_v0 = vsel %vm100_vm5, %v146_v45, %v97_v59  ;;  %v104_v1 = vmul.f32 %v150_v56, %v103_v60  ;;  %vm90_vm12 = vmor %vm88_vm11, %vm89_vm8 }
 0x109   :  { %v81_v3 = vsel %vm80_vm6, %v148_v47, %v77_v62  ;;  %v114_v4 = vmul.f32 %v101_v0, %v50_v23  ;;  %v84_v5 = vmul.f32 %v152_v58, %v83_v63 }
 0x10a   :  { %v112_v6 = vmul.f32 %v81_v3, %v48_v24  ;;  %v105_v7 = vmul.f32 0.5, %v104_v1 }
 0x10b   :  { %v122_v8 = vmul.f32 %v141_v61, %v114_v4  ;;  %v85_v9 = vmul.f32 0.5, %v84_v5 }
 0x10c   :  { %v120_v10 = vmul.f32 %v141_v61, %v112_v6  ;;  %v106_v11 = vsub.f32 1.5, %v105_v7 }
 0x10d   :  { %v130_v12 = vadd.f32 %v142_v2, %v122_v8  ;;  %v86_v13 = vsub.f32 1.5, %v85_v9 }
 0x10e   :  { %v128_v14 = vadd.f32 %v142_v2, %v120_v10  ;;  %v107_v15 = vmul.f32 %v150_v56, %v106_v11 }
 0x10f   :  { %134 = vst [vmem:[%s235_s4 + $0x10] sm:$0xff] %v130_v12  ;;  %v87_v16 = vmul.f32 %v152_v58, %v86_v13 }
 0x110   :  { %132 = vst [vmem:[%s235_s4] sm:$0xff] %v128_v14  ;;  %v111_v17 = vsel %vm110_vm10, %v150_v56, %v107_v15 }
 0x111   :  { %v115_v18 = vmul.f32 %v111_v17, %v203_v31  ;;  %v91_v19 = vsel %vm90_vm12, %v152_v58, %v87_v16 }
 0x112   :  { %v113_v20 = vmul.f32 %v91_v19, %v205_v32 }
 0x113   :  { %v123_v21 = vmul.f32 %v141_v61, %v115_v18 }
 0x114   :  { %v121_v22 = vmul.f32 %v141_v61, %v113_v20 }
 0x115   :  { %v131_v23 = vadd.f32 %v142_v2, %v123_v21 }
 0x116   :  { %v129_v24 = vadd.f32 %v142_v2, %v121_v22 }
 0x117   :  { %135 = vst [vmem:[%s235_s4 + $0x18] sm:$0xff] %v131_v23 }
 0x118   :  { %133 = vst [vmem:[%s235_s4 + $0x8] sm:$0xff] %v129_v24 }

// kernel: transformer_encoder.19
= control target key start
LH: loop header
LB: loop body
LE: loop exit
PB: predicated region body
PF: predicated region fallthrough
CT: control target
= control target key end

     0   :  { %s746_s15 = smov 0   ;;  %s748_s16 = smov 0   ;;  %s826_s0 = inlined_call_operand.vmem [shape: f32[2,4,16,32], index: 0, kind: input, shape index: {}]   ;;  %s827_s1 = inlined_call_operand.vmem [shape: f32[2,4,16,32], index: 1, kind: input, shape index: {}]   ;;  %s828_s2 = inlined_call_operand.vmem [shape: f32[2,4,16,32], index: 2, kind: input, shape index: {}]   ;;  %s829_s3 = inlined_call_operand.vmem [shape: f32[2,16,16], index: 3, kind: input, shape index: {}]   ;;  %s830_s4 = inlined_call_operand.vmem [shape: f32[2,4,16,32], index: 4, kind: output, shape index: {}]  }
   0x1   :  { %s750_s17 = smov 0   ;;  %s752_s18 = smov 0  }
   0x2   :  { %s754_s19 = smov 0  }
   0x3 LB: > { %s23_s20 = sadd.s32 1, %s711_s17  ;;  %s26_s21 = sadd.s32 1, %s715_s18  ;;  %s719_s19 = sphi %s754_s19, %s14_s19   ;;  %s715_s18 = sphi %s752_s18, %s834_s18   ;;  %s711_s17 = sphi %s750_s17, %s833_s17   ;;  %s707_s16 = sphi %s748_s16, %s832_s16   ;;  %s703_s15 = sphi %s746_s15, %s831_s15  }
   0x4   : > { %p24_p0 = scmp.ge.s32.totalorder %s23_s20, 4  ;;  %p605_p1 = scmp.ge.s32.totalorder %s719_s19, 1 }
   0x5   : > { %p224_p2 = scmp.lt.s32.totalorder %s719_s19, 9 }
   0x6   : > { %s836_s20 = smov (%p24_p0, %s23_s20), 0  ;;  %s838_s21 = smov (!%p24_p0, %s26_s21), %s715_s18 }
   0x7   : > { %p225_p3 = pnand %p605_p1, %p224_p2  ;;  %p28_p4 = scmp.ge.s32.totalorder %s838_s21, 2 }
   0x8   : > { %p281_p5 = scmp.lt.s32.totalorder (!%p225_p3), %s707_s16, 1  ;;  %p283_p6 = scmp.lt.s32.totalorder (!%p225_p3), %s703_s15, 3 }
   0x9   : > { %s840_s21 = smov (%p28_p4, %s838_s21), 0  ;;  %228 = sbr.rel (%p225_p3) target bundleno = 561 (0x231), region = 36 }
   0xe   : > { %s842_s16 = smov (!%p281_p5, %s707_s16), 1  ;;  %s844_s15 = smov (!%p283_p6, %s703_s15), 3  ;;  %vm330_vm0 = vcmask 261120   ;;  %vm372_vm2 = vcmask 130048  }
   0xf   : > { %s607_s22 = sshll.u32 %s842_s16, 3  ;;  %s606_s23 = sshll.u32 %s844_s15, 1 }
  0x10   : > { %s287_s24 = sadd.s32 %s607_s22, %s606_s23  ;;  %s628_s6 = sshll.u32 %s842_s16, 4 }
  0x11   : > { %s776_s25 = sshll.u32 %s287_s24, 3  ;;  %s312_s9 = scalar_lea.vmem %s829_s3, %s628_s6 }
  0x12   : > { %s298_s28 = scalar_lea.vmem %s827_s1, %s776_s25  ;;  %s289_s5 = scalar_lea.vmem %s826_s0, %s776_s25  ;;  %v329_v4 = vld [vmem:[%s312_s9 + $0x8] sm:$0xff]  ;;  %v328_v8 = vld [vmem:[%s312_s9] sm:$0xff] }
  0x13   : > { %v325_v0 = vld [vmem:[%s298_s28 + $0x8] sm:$0xff]  ;;  %v324_v1 = vld [vmem:[%s298_s28] sm:$0xff]  ;;  %vm369_vm1 = vcmp.gt.f32.partialorder %v329_v4, 0.5  ;;  %vm368_vm3 = vcmp.gt.f32.partialorder %v328_v8, 0.5  ;;  %s307_s12 = scalar_lea.vmem %s828_s2, %s776_s25  ;;  %s321_s15 = scalar_lea.vmem %s830_s4, %s776_s25 }
  0x14   : > { %629 = vmatpush.xpose.msk.msra.mxu2 %vm330_vm0, %v325_v0  ;;  %620 = vmatpush.xpose.msk.msra.mxu0 %vm330_vm0, %v325_v0  ;;  %v323_v2 = vld [vmem:[%s289_s5 + $0x8] sm:$0xff]  ;;  %v322_v3 = vld [vmem:[%s289_s5] sm:$0xff] }
  0x15   : > { %v327_v24 = vld [vmem:[%s307_s12 + $0x8] sm:$0xff]  ;;  %v326_v25 = vld [vmem:[%s307_s12] sm:$0xff] }
  0x16   : > { %631 = vmatpush.msra.mxu3 %v327_v24  ;;  %441 = vmatpush.msra.mxu1 %v327_v24 }
  0x18   : > { %630 = vmatpush.xpose.msk.msra.mxu2 %vm330_vm0, %v324_v1  ;;  %621 = vmatpush.xpose.msk.msra.mxu0 %vm330_vm0, %v324_v1 }
  0x19   : > { %632 = vmatpush.msra.mxu3 %v326_v25  ;;  %442 = vmatpush.msra.mxu1 %v326_v25 }
  0x1b   : > { %623 = vmatmul.msk.f32.vlgmr.msra.gmra.mxu2 %vm330_vm0, %v323_v2  ;;  %622 = vmatmul.msk.f32.vlgmr.msra.gmra.mxu0 %vm330_vm0, %v322_v3 }
  0x98   : > { %v360_v6 = vpop.f32.mrf.mxu0 }
  0x99   : > { %v366_v10 = vmul.f32 0.088388346, %v360_v6 }
  0x9b   : > { %v370_v12 = vsel %vm368_vm3, -1e+30, %v366_v10 }
  0x9c   : > { %v373_v13 = vsel %vm372_vm2, %v370_v12, -inf }
  0x9e   : > { %v363_v5 = vpop.f32.mrf.mxu2 }
  0x9f   : > { %v367_v7 = vmul.f32 0.088388346, %v363_v5 }
  0xa1   : > { %v371_v9 = vsel %vm369_vm1, -1e+30, %v367_v7 }
  0xa2   : > { %v376_v11 = vsel %vm372_vm2, %v371_v9, -inf }
  0xa3   : > { %377 = vmax.xlane.f32.xlu0 %v376_v11 }
  0xab   : > { %374 = vmax.xlane.f32.xlu0 %v373_v13 }
 0x116   : > { %v378_v14 = vpop.xlane.xlu0 %377 }
 0x117   : > { %v380_v15 = vsub.f32 %v371_v9, %v378_v14 }
 0x119   : > { %v383_v16 = vmul.f32 1.442695, %v380_v15 }
 0x11b   : > { %673 = vpow2.f32 %v383_v16 }
 0x11e   : > { %v375_v17 = vpop.xlane.xlu0 %374 }
 0x11f   : > { %v379_v18 = vsub.f32 %v370_v12, %v375_v17 }
 0x121   : > { %v674_v19 = vpop.eup %673  ;;  %v381_v20 = vmul.f32 1.442695, %v379_v18 }
 0x122   : > { %v388_v21 = vsel %vm372_vm2, %v674_v19, 0.0 }
 0x123   : > { %675 = vpow2.f32 %v381_v20  ;;  %389 = vadd.xlane.f32.xlu1 %v388_v21 }
 0x129   : > { %v676_v22 = vpop.eup %675 }
 0x12a   : > { %v385_v23 = vsel %vm372_vm2, %v676_v22, 0.0 }
 0x12b   : > { %386 = vadd.xlane.f32.xlu1 %v385_v23 }
 0x196   : > { %v390_v26 = vpop.xlane.xlu1 %389 }
 0x197   : > { %677 = vrcp.f32 %v390_v26  ;;  %v417_v31 = vand.u32 2147483648, %v390_v26  ;;  %v415_v33 = vand.u32 2147483647, %v390_v26  ;;  %vm411_vm5 = vweird.f32 %v390_v26 }
 0x199   : > { %v418_v36 = vor.u32 1.1754944e-38, %v417_v31  ;;  %vm416_vm7 = vcmp.eq.f32.partialorder %v415_v33, 8.507059e+37 }
 0x19d   : > { %v678_v27 = vpop.eup %677 }
 0x19e   : > { %v407_v28 = vmul.f32 %v678_v27, %v390_v26  ;;  %v387_v29 = vpop.xlane.xlu1 %386  ;;  %vm412_vm4 = vweird.f32 %v678_v27 }
 0x19f   : > { %679 = vrcp.f32 %v387_v29  ;;  %vm413_vm6 = vmor %vm411_vm5, %vm412_vm4  ;;  %v402_v42 = vand.u32 2147483648, %v387_v29  ;;  %v400_v44 = vand.u32 2147483647, %v387_v29  ;;  %vm396_vm9 = vweird.f32 %v387_v29 }
 0x1a0   : > { %v408_v30 = vsub.f32 1.0, %v407_v28 }
 0x1a1   : > { %v403_v46 = vor.u32 1.1754944e-38, %v402_v42  ;;  %vm401_vm11 = vcmp.eq.f32.partialorder %v400_v44, 8.507059e+37 }
 0x1a2   : > { %v409_v32 = vmul.f32 %v678_v27, %v408_v30 }
 0x1a4   : > { %v410_v34 = vadd.f32 %v678_v27, %v409_v32 }
 0x1a5   : > { %v680_v35 = vpop.eup %679 }
 0x1a6   : > { %v392_v37 = vmul.f32 %v680_v35, %v387_v29  ;;  %v414_v38 = vsel %vm413_vm6, %v678_v27, %v410_v34  ;;  %vm397_vm8 = vweird.f32 %v680_v35 }
 0x1a7   : > { %v419_v39 = vsel %vm416_vm7, %v418_v36, %v414_v38  ;;  %vm398_vm10 = vmor %vm396_vm9, %vm397_vm8 }
 0x1a8   : > { %v393_v40 = vsub.f32 1.0, %v392_v37  ;;  %v420_v41 = vmul.f32 %v674_v19, %v419_v39 }
 0x1aa   : > { %v394_v43 = vmul.f32 %v680_v35, %v393_v40  ;;  %625 = vmatmul.msk.f32.vlgmr.msra.gmra.mxu3 %vm372_vm2, %v420_v41 }
 0x1ac   : > { %v395_v45 = vadd.f32 %v680_v35, %v394_v43 }
 0x1ae   : > { %v399_v47 = vsel %vm398_vm10, %v680_v35, %v395_v45 }
 0x1af   : > { %v404_v48 = vsel %vm401_vm11, %v403_v46, %v399_v47 }
 0x1b0   : > { %v405_v49 = vmul.f32 %v676_v22, %v404_v48 }
 0x1b2   : > { %624 = vmatmul.msk.f32.vlgmr.msra.gmra.mxu1 %vm372_vm2, %v405_v49 }
 0x22d   : > { %v447_v50 = vpop.f32.mrf.mxu3 }
 0x22e   : > { %451 = vst.msk [vmem:[%s321_s15 + $0x8] sm:$0xff] %vm330_vm0, %v447_v50 }
 0x22f   : > { %v444_v51 = vpop.f32.mrf.mxu1 }
 0x230   : > { %450 = vst.msk [vmem:[%s321_s15] sm:$0xff] %vm330_vm0, %v444_v51 }
 0x231 PF: > { %s14_s19 = sadd.s32 1, %s719_s19   ;;  %s831_s15 = smov %s711_s17 }
 0x232   : > { %p11_p7 = scmp.ge.s32.totalorder %s14_s19, 10   ;;  %s832_s16 = smov %s715_s18 }
 0x233   : > { %s833_s17 = smov %s836_s20  ;;  %s834_s18 = smov %s840_s21 }
 0x234   :  { %13 = sbr.rel (!%p11_p7) target bundleno = 3 (0x3), region = 75 }

// kernel: transformer_encoder.31
= control target key start
LH: loop header
LB: loop body
LE: loop exit
PB: predicated region body
PF: predicated region fallthrough
CT: control target
= control target key end

     0   :  { %s269_s0 = inlined_call_operand.vmem [shape: f32[32,128], index: 0, kind: input, shape index: {}]   ;;  %s270_s1 = inlined_call_operand.vmem [shape: f32[32,128], index: 1, kind: input, shape index: {}]   ;;  %s271_s2 = inlined_call_operand.vmem [shape: f32[1,128], index: 2, kind: input, shape index: {}]   ;;  %s272_s3 = inlined_call_operand.vmem [shape: f32[1,128], index: 3, kind: input, shape index: {}]   ;;  %s273_s4 = inlined_call_operand.hbm [shape: f32[32,128], index: 4, kind: output, shape index: {}]  }
   0x1   :  { %v20_v0 = vld [vmem:[%s269_s0 + $0x10] sm:$0xff]  ;;  %v18_v2 = vld [vmem:[%s269_s0] sm:$0xff] }
   0x2   :  { %v24_v1 = vld [vmem:[%s270_s1 + $0x10] sm:$0xff]  ;;  %v22_v4 = vld [vmem:[%s270_s1] sm:$0xff] }
   0x3   :  { %v28_v3 = vadd.f32 %v24_v1, %v20_v0  ;;  %v26_v5 = vadd.f32 %v22_v4, %v18_v2 }
   0x5   :  { %34 = vadd.xlane.f32.xlu1 %v28_v3 }
   0x6   :  { %9 = vsyncpa [#allocation3], 0  ;;  %30 = vadd.xlane.f32.xlu0 %v26_v5  ;;  %v21_v6 = vld [vmem:[%s269_s0 + $0x18] sm:$0xff]  ;;  %v19_v8 = vld [vmem:[%s269_s0 + $0x8] sm:$0xff]  ;;  %v197_v12 = vmov 128.0   ;;  %s143_s9 = sshll.u32 %s273_s4, 4  ;;  %s144_s9 = int_to_ptr.hbm [resolvable:$true] %s143_s9 }
   0x7   :  { %v25_v7 = vld [vmem:[%s270_s1 + $0x18] sm:$0xff]  ;;  %v23_v9 = vld [vmem:[%s270_s1 + $0x8] sm:$0xff]  ;;  %161 = vrcp.f32 %v197_v12  ;;  %v159_v61 = vld [vmem:[%s271_s2] ss:$0 sm:$0xff]  ;;  %s198_s2 = smov [#allocation2]   ;;  %s199_s10 = smov 128  }
   0x8   :  { %v29_v10 = vadd.f32 %v25_v7, %v21_v6  ;;  %v27_v11 = vadd.f32 %v23_v9, %v19_v8  ;;  %v160_v2 = vld [vmem:[%s272_s3] ss:$0 sm:$0xff]  ;;  %s141_s3 = sshll.u32 %s198_s2, 4  ;;  %s200_s11 = smov 8   ;;  %s142_s3 = int_to_ptr.vmem [resolvable:$true] %s141_s3 }
   0xd   :  { %36 = vadd.xlane.f32.xlu1 %v29_v10  ;;  %v162_v13 = vpop.eup %161 }
   0xe   :  { %32 = vadd.xlane.f32.xlu0 %v27_v11  ;;  %v39_v14 = vmul.f32 128.0, %v162_v13  ;;  %vm43_vm0 = vweird.f32 %v162_v13 }
  0x10   :  { %v40_v15 = vsub.f32 1.0, %v39_v14 }
  0x12   :  { %v41_v16 = vmul.f32 %v162_v13, %v40_v15 }
  0x14   :  { %v42_v17 = vadd.f32 %v162_v13, %v41_v16 }
  0x16   :  { %v44_v18 = vsel %vm43_vm0, %v162_v13, %v42_v17 }
  0x78   :  { %v35_v19 = vpop.xlane.xlu1 %34 }
  0x79   :  { %v47_v20 = vmul.f32 %v44_v18, %v35_v19  ;;  %v31_v21 = vpop.xlane.xlu0 %30 }
  0x7a   :  { %v45_v22 = vmul.f32 %v44_v18, %v31_v21 }
  0x7b   :  { %v51_v23 = vsub.f32 %v28_v3, %v47_v20 }
  0x7c   :  { %v49_v24 = vsub.f32 %v26_v5, %v45_v22 }
  0x7d   :  { %v55_v25 = vmul.f32 %v51_v23, %v51_v23 }
  0x7e   :  { %v53_v26 = vmul.f32 %v49_v24, %v49_v24 }
  0x7f   :  { %61 = vadd.xlane.f32.xlu0 %v55_v25 }
  0x80   :  { %57 = vadd.xlane.f32.xlu2 %v53_v26  ;;  %v37_v27 = vpop.xlane.xlu1 %36 }
  0x81   :  { %v48_v28 = vmul.f32 %v44_v18, %v37_v27  ;;  %v33_v29 = vpop.xlane.xlu0 %32 }
  0x82   :  { %v46_v30 = vmul.f32 %v44_v18, %v33_v29 }
  0x83   :  { %v250_v31 = vsub.f32 %v29_v10, %v48_v28 }
  0x84   :  { %v252_v32 = vsub.f32 %v27_v11, %v46_v30 }
  0x85   :  { %v56_v33 = vmul.f32 %v250_v31, %v250_v31 }
  0x86   :  { %v54_v34 = vmul.f32 %v252_v32, %v252_v32 }
  0x87   :  { %63 = vadd.xlane.f32.xlu1 %v56_v33 }
  0x88   :  { %59 = vadd.xlane.f32.xlu2 %v54_v34 }
  0xf2   :  { %v62_v35 = vpop.xlane.xlu0 %61 }
  0xf3   :  { %v58_v36 = vpop.xlane.xlu2 %57  ;;  %v67_v37 = vmul.f32 %v62_v35, %v44_v18 }
  0xf4   :  { %v65_v38 = vmul.f32 %v58_v36, %v44_v18 }
  0xf5   :  { %v71_v39 = vadd.f32 1e-05, %v67_v37 }
  0xf6   :  { %v69_v40 = vadd.f32 1e-05, %v65_v38 }
  0xf7   :  { %163 = vrsqrt.f32 %v71_v39  ;;  %vm99_vm3 = vweird.f32 %v71_v39 }
  0xf8   :  { %165 = vrsqrt.f32 %v69_v40  ;;  %vm79_vm4 = vweird.f32 %v69_v40 }
  0xfa   :  { %v64_v41 = vpop.xlane.xlu1 %63 }
  0xfb   :  { %v68_v42 = vmul.f32 %v64_v41, %v44_v18  ;;  %v60_v43 = vpop.xlane.xlu2 %59 }
  0xfc   :  { %v66_v44 = vmul.f32 %v60_v43, %v44_v18 }
  0xfd   :  { %v164_v45 = vpop.eup %163  ;;  %v72_v46 = vadd.f32 1e-05, %v68_v42 }
  0xfe   :  { %v166_v47 = vpop.eup %165  ;;  %v94_v48 = vmul.f32 %v164_v45, %v71_v39  ;;  %v70_v49 = vadd.f32 1e-05, %v66_v44  ;;  %vm100_vm1 = vweird.f32 %v164_v45 }
  0xff   :  { %v74_v50 = vmul.f32 %v166_v47, %v69_v40  ;;  %167 = vrsqrt.f32 %v72_v46  ;;  %vm80_vm2 = vweird.f32 %v166_v47  ;;  %vm101_vm5 = vmor %vm99_vm3, %vm100_vm1  ;;  %vm109_vm9 = vweird.f32 %v72_v46 }
 0x100   :  { %v95_v51 = vmul.f32 %v164_v45, %v94_v48  ;;  %169 = vrsqrt.f32 %v70_v49  ;;  %vm81_vm6 = vmor %vm79_vm4, %vm80_vm2  ;;  %vm89_vm11 = vweird.f32 %v70_v49 }
 0x101   :  { %v75_v52 = vmul.f32 %v166_v47, %v74_v50 }
 0x102   :  { %v96_v53 = vmul.f32 0.5, %v95_v51 }
 0x103   :  { %v76_v54 = vmul.f32 0.5, %v75_v52 }
 0x104   :  { %v97_v55 = vsub.f32 1.5, %v96_v53 }
 0x105   :  { %v168_v56 = vpop.eup %167  ;;  %v77_v57 = vsub.f32 1.5, %v76_v54 }
 0x106   :  { %v170_v58 = vpop.eup %169  ;;  %v98_v59 = vmul.f32 %v164_v45, %v97_v55  ;;  %v104_v60 = vmul.f32 %v168_v56, %v72_v46  ;;  %vm110_vm7 = vweird.f32 %v168_v56 }
 0x107   :  { %v78_v62 = vmul.f32 %v166_v47, %v77_v57  ;;  %v84_v63 = vmul.f32 %v170_v58, %v70_v49  ;;  %vm90_vm8 = vweird.f32 %v170_v58  ;;  %vm111_vm10 = vmor %vm109_vm9, %vm110_vm7 }
 0x108   :  { %v102_v0 = vsel %vm101_vm5, %v164_v45, %v98_v59  ;;  %v105_v1 = vmul.f32 %v168_v56, %v104_v60  ;;  %vm91_vm12 = vmor %vm89_vm11, %vm90_vm8 }
 0x109   :  { %v82_v3 = vsel %vm81_vm6, %v166_v47, %v78_v62  ;;  %v115_v4 = vmul.f32 %v102_v0, %v51_v23  ;;  %v85_v5 = vmul.f32 %v170_v58, %v84_v63 }
 0x10a   :  { %v113_v6 = vmul.f32 %v82_v3, %v49_v24  ;;  %v106_v7 = vmul.f32 0.5, %v105_v1 }
 0x10b   :  { %v123_v8 = vmul.f32 %v159_v61, %v115_v4  ;;  %v86_v9 = vmul.f32 0.5, %v85_v5 }
 0x10c   :  { %v121_v10 = vmul.f32 %v159_v61, %v113_v6  ;;  %v107_v11 = vsub.f32 1.5, %v106_v7 }
 0x10d   :  { %v131_v12 = vadd.f32 %v160_v2, %v123_v8  ;;  %v87_v13 = vsub.f32 1.5, %v86_v9 }
 0x10e   :  { %v129_v14 = vadd.f32 %v160_v2, %v121_v10  ;;  %v108_v15 = vmul.f32 %v168_v56, %v107_v11 }
 0x10f   :  { %135 = vst [vmem:[#allocation2 + $0x10] sm:$0xff] %v131_v12  ;;  %v88_v16 = vmul.f32 %v170_v58, %v87_v13 }
 0x110   :  { %133 = vst [vmem:[#allocation2] sm:$0xff] %v129_v14  ;;  %v112_v17 = vsel %vm111_vm10, %v168_v56, %v108_v15 }
 0x111   :  { %v116_v18 = vmul.f32 %v112_v17, %v250_v31  ;;  %v92_v19 = vsel %vm91_vm12, %v170_v58, %v88_v16 }
 0x112   :  { %v114_v20 = vmul.f32 %v92_v19, %v252_v32 }
 0x113   :  { %v124_v21 = vmul.f32 %v159_v61, %v116_v18 }
 0x114   :  { %v122_v22 = vmul.f32 %v159_v61, %v114_v20 }
 0x115   :  { %v132_v23 = vadd.f32 %v160_v2, %v124_v21 }
 0x116   :  { %v130_v24 = vadd.f32 %v160_v2, %v122_v22 }
 0x117   :  { %136 = vst [vmem:[#allocation2 + $0x18] sm:$0xff] %v132_v23 }
 0x118   :  { %134 = vst [vmem:[#allocation2 + $0x8] sm:$0xff] %v130_v24 }
 0x119   :  { %149 = dma.vmem_to_hbm [thread:$0]  %s142_s3, 512, %s144_s9, [#allocation3], %s199_s10, %s199_s10, %s200_s11  }
 0x11a   :  { %195 = dma.done.wait [#allocation3], 512  }
 0x11b   :  { %196 = vsyncadd [#allocation3], 4294966784 }
 0x11c   :  { %154 = vsyncpa [#allocation3], 1 }

// kernel: transformer_encoder.22
= control target key start
LH: loop header
LB: loop body
LE: loop exit
PB: predicated region body
PF: predicated region fallthrough
CT: control target
= control target key end

     0   :  { %s1118_s18 = smov 0   ;;  %s1120_s19 = smov 0   ;;  %s1488_s0 = inlined_call_operand.vmem [shape: f32[32,128], index: 0, kind: input, shape index: {}]   ;;  %s1489_s1 = inlined_call_operand.vmem [shape: f32[128,1024], index: 1, kind: input, shape index: {}]   ;;  %s1490_s2 = inlined_call_operand.vmem [shape: f32[1,1024], index: 2, kind: input, shape index: {}]   ;;  %s1491_s3 = inlined_call_operand.vmem [shape: f32[1024,128], index: 3, kind: input, shape index: {}]   ;;  %s1492_s4 = inlined_call_operand.vmem [shape: f32[1,128], index: 4, kind: input, shape index: {}]   ;;  %s1493_s5 = inlined_call_operand.vmem [shape: f32[32,128], index: 5, kind: output, shape index: {}]  }
   0x1   :  { %s1122_s20 = smov 0   ;;  %s1124_s21 = smov 0  }
   0x2   :  { %s1126_s22 = smov 0  }
   0x3 LB: > { %s24_s23 = sadd.s32 1, %s1081_s21  ;;  %p67_p1 = scmp.ne.s32.totalorder %s1073_s19, %s1069_s18  ;;  %s1085_s22 = sphi %s1126_s22, %s15_s22   ;;  %s1081_s21 = sphi %s1124_s21, %s1497_s21   ;;  %s1077_s20 = sphi %s1122_s20, %s1496_s20   ;;  %s1073_s19 = sphi %s1120_s19, %s1495_s19   ;;  %s1069_s18 = sphi %s1118_s18, %s1494_s18  }
   0x4   : > { %p25_p0 = scmp.ge.s32.totalorder %s24_s23, 2  ;;  %p68_p2 = scmp.eq.s32.totalorder %s1085_s22, 0 }
   0x5   : > { %s60_s25 = sadd.s32 1, %s1073_s19  ;;  %p989_p5 = scmp.ge.s32.totalorder %s1085_s22, 2 }
   0x6   : > { %s1499_s23 = smov (%p25_p0, %s24_s23), 0  ;;  %p69_p3 = por %p68_p2, %p67_p1 }
   0x7   : > { %s57_s24 = ssub.s32 %s1081_s21, %s1499_s23  ;;  %204 = sbr.rel (%p989_p5) target bundleno = 80 (0x50), region = 24 }
   0x8   : > { %p58_p4 = scmp.eq.s32.totalorder %s57_s24, 0 }
   0xa   : > { %s1153_s26 = scalar_select %p58_p4, %s1073_s19, %s60_s25  }
   0xc   : > { %207 = sbr.rel (!%p69_p3) target bundleno = 80 (0x50), region = 28  ;;  %s209_s27 = sand.u32 (%p69_p3), 1, %s1073_s19  }
   0xd   : > { %s1004_s28 = sshll.u32 (%p69_p3), %s1081_s21, 5  ;;  %s990_s29 = sshll.u32 (%p69_p3), %s209_s27, 9 }
   0xe   : > { %s1161_s7 = scalar_lea.vmem (%p69_p3), %s1489_s1, %s1004_s28  ;;  %s1166_s8 = scalar_lea.vmem (%p69_p3), [#allocation3], %s990_s29 }
   0xf   : > { %v227_v0 = vld [vmem:[%s1161_s7] sm:$0xff] (%p69_p3)  ;;  %v229_v1 = vld [vmem:[%s1161_s7 + $0x8] sm:$0xff] (%p69_p3)  ;;  %v231_v2 = vld [vmem:[%s1161_s7 + $0x10] sm:$0xff] (%p69_p3) }
  0x10   : > { %228 = vst [vmem:[%s1166_s8] sm:$0xff] (%p69_p3), %v227_v0  ;;  %v233_v3 = vld [vmem:[%s1161_s7 + $0x18] sm:$0xff] (%p69_p3)  ;;  %v235_v4 = vld [vmem:[%s1161_s7 + $0x40] sm:$0xff] (%p69_p3)  ;;  %v237_v5 = vld [vmem:[%s1161_s7 + $0x48] sm:$0xff] (%p69_p3) }
  0x11   : > { %230 = vst [vmem:[%s1166_s8 + $0x8] sm:$0xff] %v229_v1  ;;  %v239_v6 = vld [vmem:[%s1161_s7 + $0x50] sm:$0xff]  ;;  %v241_v7 = vld [vmem:[%s1161_s7 + $0x58] sm:$0xff]  ;;  %v243_v8 = vld [vmem:[%s1161_s7 + $0x80] sm:$0xff] }
  0x12   : > { %232 = vst [vmem:[%s1166_s8 + $0x10] sm:$0xff] %v231_v2  ;;  %v245_v9 = vld [vmem:[%s1161_s7 + $0x88] sm:$0xff]  ;;  %v247_v10 = vld [vmem:[%s1161_s7 + $0x90] sm:$0xff]  ;;  %v249_v11 = vld [vmem:[%s1161_s7 + $0x98] sm:$0xff] }
  0x13   : > { %234 = vst [vmem:[%s1166_s8 + $0x18] sm:$0xff] %v233_v3  ;;  %v251_v12 = vld [vmem:[%s1161_s7 + $0xc0] sm:$0xff]  ;;  %v253_v13 = vld [vmem:[%s1161_s7 + $0xc8] sm:$0xff]  ;;  %v255_v14 = vld [vmem:[%s1161_s7 + $0xd0] sm:$0xff] }
  0x14   : > { %236 = vst [vmem:[%s1166_s8 + $0x20] sm:$0xff] %v235_v4  ;;  %v257_v15 = vld [vmem:[%s1161_s7 + $0xd8] sm:$0xff]  ;;  %v259_v16 = vld [vmem:[%s1161_s7 + $0x100] sm:$0xff]  ;;  %v261_v17 = vld [vmem:[%s1161_s7 + $0x108] sm:$0xff] }
  0x15   : > { %238 = vst [vmem:[%s1166_s8 + $0x28] sm:$0xff] %v237_v5  ;;  %v263_v18 = vld [vmem:[%s1161_s7 + $0x110] sm:$0xff]  ;;  %v265_v19 = vld [vmem:[%s1161_s7 + $0x118] sm:$0xff]  ;;  %v267_v20 = vld [vmem:[%s1161_s7 + $0x140] sm:$0xff] }
  0x16   : > { %240 = vst [vmem:[%s1166_s8 + $0x30] sm:$0xff] %v239_v6  ;;  %v269_v21 = vld [vmem:[%s1161_s7 + $0x148] sm:$0xff]  ;;  %v271_v22 = vld [vmem:[%s1161_s7 + $0x150] sm:$0xff]  ;;  %v273_v23 = vld [vmem:[%s1161_s7 + $0x158] sm:$0xff] }
  0x17   : > { %242 = vst [vmem:[%s1166_s8 + $0x38] sm:$0xff] %v241_v7  ;;  %v275_v24 = vld [vmem:[%s1161_s7 + $0x180] sm:$0xff]  ;;  %v277_v25 = vld [vmem:[%s1161_s7 + $0x188] sm:$0xff]  ;;  %v279_v26 = vld [vmem:[%s1161_s7 + $0x190] sm:$0xff] }
  0x18   : > { %244 = vst [vmem:[%s1166_s8 + $0x40] sm:$0xff] %v243_v8  ;;  %v281_v27 = vld [vmem:[%s1161_s7 + $0x198] sm:$0xff]  ;;  %v283_v28 = vld [vmem:[%s1161_s7 + $0x1c0] sm:$0xff]  ;;  %v285_v29 = vld [vmem:[%s1161_s7 + $0x1c8] sm:$0xff] }
  0x19   : > { %246 = vst [vmem:[%s1166_s8 + $0x48] sm:$0xff] %v245_v9  ;;  %v287_v30 = vld [vmem:[%s1161_s7 + $0x1d0] sm:$0xff]  ;;  %v289_v31 = vld [vmem:[%s1161_s7 + $0x1d8] sm:$0xff]  ;;  %v291_v32 = vld [vmem:[%s1161_s7 + $0x200] sm:$0xff] }
  0x1a   : > { %248 = vst [vmem:[%s1166_s8 + $0x50] sm:$0xff] %v247_v10  ;;  %v293_v33 = vld [vmem:[%s1161_s7 + $0x208] sm:$0xff]  ;;  %v295_v34 = vld [vmem:[%s1161_s7 + $0x210] sm:$0xff]  ;;  %v297_v35 = vld [vmem:[%s1161_s7 + $0x218] sm:$0xff] }
  0x1b   : > { %250 = vst [vmem:[%s1166_s8 + $0x58] sm:$0xff] %v249_v11  ;;  %v299_v36 = vld [vmem:[%s1161_s7 + $0x240] sm:$0xff]  ;;  %v301_v37 = vld [vmem:[%s1161_s7 + $0x248] sm:$0xff]  ;;  %v303_v38 = vld [vmem:[%s1161_s7 + $0x250] sm:$0xff] }
  0x1c   : > { %252 = vst [vmem:[%s1166_s8 + $0x60] sm:$0xff] %v251_v12  ;;  %v305_v39 = vld [vmem:[%s1161_s7 + $0x258] sm:$0xff]  ;;  %v307_v40 = vld [vmem:[%s1161_s7 + $0x280] sm:$0xff]  ;;  %v309_v41 = vld [vmem:[%s1161_s7 + $0x288] sm:$0xff] }
  0x1d   : > { %254 = vst [vmem:[%s1166_s8 + $0x68] sm:$0xff] %v253_v13  ;;  %v311_v42 = vld [vmem:[%s1161_s7 + $0x290] sm:$0xff]  ;;  %v313_v43 = vld [vmem:[%s1161_s7 + $0x298] sm:$0xff]  ;;  %v315_v44 = vld [vmem:[%s1161_s7 + $0x2c0] sm:$0xff] }
  0x1e   : > { %256 = vst [vmem:[%s1166_s8 + $0x70] sm:$0xff] %v255_v14  ;;  %v317_v45 = vld [vmem:[%s1161_s7 + $0x2c8] sm:$0xff]  ;;  %v319_v46 = vld [vmem:[%s1161_s7 + $0x2d0] sm:$0xff]  ;;  %v321_v47 = vld [vmem:[%s1161_s7 + $0x2d8] sm:$0xff] }
  0x1f   : > { %258 = vst [vmem:[%s1166_s8 + $0x78] sm:$0xff] %v257_v15  ;;  %v323_v48 = vld [vmem:[%s1161_s7 + $0x300] sm:$0xff]  ;;  %v325_v49 = vld [vmem:[%s1161_s7 + $0x308] sm:$0xff]  ;;  %v327_v50 = vld [vmem:[%s1161_s7 + $0x310] sm:$0xff] }
  0x20   : > { %260 = vst [vmem:[%s1166_s8 + $0x80] sm:$0xff] %v259_v16  ;;  %v329_v51 = vld [vmem:[%s1161_s7 + $0x318] sm:$0xff]  ;;  %v331_v52 = vld [vmem:[%s1161_s7 + $0x340] sm:$0xff]  ;;  %v333_v53 = vld [vmem:[%s1161_s7 + $0x348] sm:$0xff] }
  0x21   : > { %262 = vst [vmem:[%s1166_s8 + $0x88] sm:$0xff] %v261_v17  ;;  %v335_v54 = vld [vmem:[%s1161_s7 + $0x350] sm:$0xff]  ;;  %v337_v55 = vld [vmem:[%s1161_s7 + $0x358] sm:$0xff]  ;;  %v339_v56 = vld [vmem:[%s1161_s7 + $0x380] sm:$0xff] }
  0x22   : > { %264 = vst [vmem:[%s1166_s8 + $0x90] sm:$0xff] %v263_v18  ;;  %v341_v57 = vld [vmem:[%s1161_s7 + $0x388] sm:$0xff]  ;;  %v343_v58 = vld [vmem:[%s1161_s7 + $0x390] sm:$0xff]  ;;  %v345_v59 = vld [vmem:[%s1161_s7 + $0x398] sm:$0xff] }
  0x23   : > { %266 = vst [vmem:[%s1166_s8 + $0x98] sm:$0xff] %v265_v19  ;;  %v347_v60 = vld [vmem:[%s1161_s7 + $0x3c0] sm:$0xff]  ;;  %v349_v61 = vld [vmem:[%s1161_s7 + $0x3c8] sm:$0xff]  ;;  %v351_v62 = vld [vmem:[%s1161_s7 + $0x3d0] sm:$0xff] }
  0x24   : > { %268 = vst [vmem:[%s1166_s8 + $0xa0] sm:$0xff] %v267_v20  ;;  %v353_v63 = vld [vmem:[%s1161_s7 + $0x3d8] sm:$0xff] }
  0x25   : > { %270 = vst [vmem:[%s1166_s8 + $0xa8] sm:$0xff] %v269_v21 }
  0x26   : > { %272 = vst [vmem:[%s1166_s8 + $0xb0] sm:$0xff] %v271_v22 }
  0x27   : > { %274 = vst [vmem:[%s1166_s8 + $0xb8] sm:$0xff] %v273_v23 }
  0x28   : > { %276 = vst [vmem:[%s1166_s8 + $0xc0] sm:$0xff] %v275_v24 }
  0x29   : > { %278 = vst [vmem:[%s1166_s8 + $0xc8] sm:$0xff] %v277_v25 }
  0x2a   : > { %280 = vst [vmem:[%s1166_s8 + $0xd0] sm:$0xff] %v279_v26 }
  0x2b   : > { %282 = vst [vmem:[%s1166_s8 + $0xd8] sm:$0xff] %v281_v27 }
  0x2c   : > { %284 = vst [vmem:[%s1166_s8 + $0xe0] sm:$0xff] %v283_v28 }
  0x2d   : > { %286 = vst [vmem:[%s1166_s8 + $0xe8] sm:$0xff] %v285_v29 }
  0x2e   : > { %288 = vst [vmem:[%s1166_s8 + $0xf0] sm:$0xff] %v287_v30 }
  0x2f   : > { %290 = vst [vmem:[%s1166_s8 + $0xf8] sm:$0xff] %v289_v31 }
  0x30   : > { %292 = vst [vmem:[%s1166_s8 + $0x100] sm:$0xff] %v291_v32 }
  0x31   : > { %294 = vst [vmem:[%s1166_s8 + $0x108] sm:$0xff] %v293_v33 }
  0x32   : > { %296 = vst [vmem:[%s1166_s8 + $0x110] sm:$0xff] %v295_v34 }
  0x33   : > { %298 = vst [vmem:[%s1166_s8 + $0x118] sm:$0xff] %v297_v35 }
  0x34   : > { %300 = vst [vmem:[%s1166_s8 + $0x120] sm:$0xff] %v299_v36 }
  0x35   : > { %302 = vst [vmem:[%s1166_s8 + $0x128] sm:$0xff] %v301_v37 }
  0x36   : > { %304 = vst [vmem:[%s1166_s8 + $0x130] sm:$0xff] %v303_v38 }
  0x37   : > { %306 = vst [vmem:[%s1166_s8 + $0x138] sm:$0xff] %v305_v39 }
  0x38   : > { %308 = vst [vmem:[%s1166_s8 + $0x140] sm:$0xff] %v307_v40 }
  0x39   : > { %310 = vst [vmem:[%s1166_s8 + $0x148] sm:$0xff] %v309_v41 }
  0x3a   : > { %312 = vst [vmem:[%s1166_s8 + $0x150] sm:$0xff] %v311_v42 }
  0x3b   : > { %314 = vst [vmem:[%s1166_s8 + $0x158] sm:$0xff] %v313_v43 }
  0x3c   : > { %316 = vst [vmem:[%s1166_s8 + $0x160] sm:$0xff] %v315_v44 }
  0x3d   : > { %318 = vst [vmem:[%s1166_s8 + $0x168] sm:$0xff] %v317_v45 }
  0x3e   : > { %320 = vst [vmem:[%s1166_s8 + $0x170] sm:$0xff] %v319_v46 }
  0x3f   : > { %322 = vst [vmem:[%s1166_s8 + $0x178] sm:$0xff] %v321_v47 }
  0x40   : > { %324 = vst [vmem:[%s1166_s8 + $0x180] sm:$0xff] %v323_v48 }
  0x41   : > { %326 = vst [vmem:[%s1166_s8 + $0x188] sm:$0xff] %v325_v49 }
  0x42   : > { %328 = vst [vmem:[%s1166_s8 + $0x190] sm:$0xff] %v327_v50 }
  0x43   : > { %330 = vst [vmem:[%s1166_s8 + $0x198] sm:$0xff] %v329_v51 }
  0x44   : > { %332 = vst [vmem:[%s1166_s8 + $0x1a0] sm:$0xff] %v331_v52 }
  0x45   : > { %334 = vst [vmem:[%s1166_s8 + $0x1a8] sm:$0xff] %v333_v53 }
  0x46   : > { %336 = vst [vmem:[%s1166_s8 + $0x1b0] sm:$0xff] %v335_v54 }
  0x47   : > { %338 = vst [vmem:[%s1166_s8 + $0x1b8] sm:$0xff] %v337_v55 }
  0x48   : > { %340 = vst [vmem:[%s1166_s8 + $0x1c0] sm:$0xff] %v339_v56 }
  0x49   : > { %342 = vst [vmem:[%s1166_s8 + $0x1c8] sm:$0xff] %v341_v57 }
  0x4a   : > { %344 = vst [vmem:[%s1166_s8 + $0x1d0] sm:$0xff] %v343_v58 }
  0x4b   : > { %346 = vst [vmem:[%s1166_s8 + $0x1d8] sm:$0xff] %v345_v59 }
  0x4c   : > { %348 = vst [vmem:[%s1166_s8 + $0x1e0] sm:$0xff] %v347_v60 }
  0x4d   : > { %350 = vst [vmem:[%s1166_s8 + $0x1e8] sm:$0xff] %v349_v61 }
  0x4e   : > { %352 = vst [vmem:[%s1166_s8 + $0x1f0] sm:$0xff] %v351_v62 }
  0x4f   : > { %354 = vst [vmem:[%s1166_s8 + $0x1f8] sm:$0xff] %v353_v63 }
  0x50 PF: > { %p993_p6 = scmp.ge.s32.totalorder %s1085_s22, 1  ;;  %p376_p7 = scmp.lt.s32.totalorder %s1085_s22, 3 }
  0x52   : > { %p377_p8 = pnand %p993_p6, %p376_p7 }
  0x53   : > { %s383_s9 = sand.u32 (!%p377_p8), 1, %s1069_s18   ;;  %s995_s10 = sshll.u32 (!%p377_p8), %s1077_s20, 2 }
  0x54   : > { %380 = sbr.rel (%p377_p8) target bundleno = 444 (0x1bc), region = 59  ;;  %s994_s11 = sshll.u32 (!%p377_p8), %s383_s9, 9 }
  0x55   : > { %p432_p9 = scmp.lt.s32.totalorder (!%p377_p8), %s995_s10, 7  ;;  %s996_s12 = sshll.u32 (!%p377_p8), %s1077_s20, 6 }
  0x56   : > { %p437_p10 = scmp.lt.s32.totalorder (!%p377_p8), %s996_s12, 127  ;;  %s1309_s18 = scalar_lea.vmem (!%p377_p8), [#allocation3], %s994_s11 }
  0x57   : > { %p998_p11 = scmp.ne.s32.totalorder (!%p377_p8), %s1077_s20, 0 }
  0x59   : > { %s1501_s10 = smov (!%p432_p9, %s995_s10), 7  ;;  %s1503_s12 = smov (!%p437_p10, %s996_s12), 127 }
  0x5a   : > { %s434_s15 = scalar_lea.vmem %s1490_s2, %s1501_s10  ;;  %s997_s16 = sshll.u32 %s1503_s12, 3 }
  0x5b   : > { %s1307_s25 = scalar_lea.vmem %s1491_s3, %s997_s16  ;;  %451 = sbr.rel (%p998_p11) target bundleno = 101 (0x65), region = 67 }
  0x60   : > { %v1087_v0 = vmov 0.0  }
  0x61   : > { %452 = vst [vmem:[#allocation2 + $0x10] sm:$0xff] %v1087_v0 }
  0x62   : > { %453 = vst [vmem:[#allocation2] sm:$0xff] %v1087_v0 }
  0x63   : > { %454 = vst [vmem:[#allocation2 + $0x18] sm:$0xff] %v1087_v0 }
  0x64   : > { %455 = vst [vmem:[#allocation2 + $0x8] sm:$0xff] %v1087_v0 }
  0x65 PF: > { %v522_v1 = vld [vmem:[%s1309_s18 + $0x1f0] sm:$0xff]  ;;  %v523_v3 = vld [vmem:[%s1309_s18 + $0x1f8] sm:$0xff]  ;;  %v520_v8 = vld [vmem:[%s1309_s18 + $0x1e0] sm:$0xff]  ;;  %p999_p12 = scmp.ne.s32.totalorder %s1077_s20, 1 }
  0x66   : > { %v518_v2 = vld [vmem:[%s1309_s18 + $0x1d0] sm:$0xff]  ;;  %592 = vmatpush.msra.mxu2 %v522_v1  ;;  %621 = vmatpush.msra.mxu3 %v523_v3  ;;  %v519_v4 = vld [vmem:[%s1309_s18 + $0x1d8] sm:$0xff]  ;;  %v521_v9 = vld [vmem:[%s1309_s18 + $0x1e8] sm:$0xff] }
  0x67   : > { %v514_v5 = vld [vmem:[%s1309_s18 + $0x1b0] sm:$0xff]  ;;  %v515_v6 = vld [vmem:[%s1309_s18 + $0x1b8] sm:$0xff]  ;;  %534 = vmatpush.msra.mxu0 %v520_v8  ;;  %563 = vmatpush.msra.mxu1 %v521_v9  ;;  %v516_v11 = vld [vmem:[%s1309_s18 + $0x1c0] sm:$0xff] }
  0x68   : > { %593 = vmatpush.msra.mxu2 %v518_v2  ;;  %622 = vmatpush.msra.mxu3 %v519_v4  ;;  %v510_v7 = vld [vmem:[%s1309_s18 + $0x190] sm:$0xff]  ;;  %v511_v10 = vld [vmem:[%s1309_s18 + $0x198] sm:$0xff]  ;;  %v517_v12 = vld [vmem:[%s1309_s18 + $0x1c8] sm:$0xff] }
  0x69   : > { %v512_v13 = vld [vmem:[%s1309_s18 + $0x1a0] sm:$0xff]  ;;  %v506_v14 = vld [vmem:[%s1309_s18 + $0x170] sm:$0xff]  ;;  %v507_v15 = vld [vmem:[%s1309_s18 + $0x178] sm:$0xff]  ;;  %535 = vmatpush.msra.mxu0 %v516_v11  ;;  %564 = vmatpush.msra.mxu1 %v517_v12 }
  0x6a   : > { %594 = vmatpush.msra.mxu2 %v514_v5  ;;  %623 = vmatpush.msra.mxu3 %v515_v6  ;;  %v513_v16 = vld [vmem:[%s1309_s18 + $0x1a8] sm:$0xff]  ;;  %v508_v17 = vld [vmem:[%s1309_s18 + $0x180] sm:$0xff]  ;;  %v502_v19 = vld [vmem:[%s1309_s18 + $0x150] sm:$0xff] }
  0x6b   : > { %v509_v18 = vld [vmem:[%s1309_s18 + $0x188] sm:$0xff]  ;;  %v503_v20 = vld [vmem:[%s1309_s18 + $0x158] sm:$0xff]  ;;  %536 = vmatpush.msra.mxu0 %v512_v13  ;;  %565 = vmatpush.msra.mxu1 %v513_v16  ;;  %v504_v21 = vld [vmem:[%s1309_s18 + $0x160] sm:$0xff] }
  0x6c   : > { %595 = vmatpush.msra.mxu2 %v510_v7  ;;  %624 = vmatpush.msra.mxu3 %v511_v10  ;;  %v505_v22 = vld [vmem:[%s1309_s18 + $0x168] sm:$0xff]  ;;  %v498_v23 = vld [vmem:[%s1309_s18 + $0x130] sm:$0xff]  ;;  %v499_v24 = vld [vmem:[%s1309_s18 + $0x138] sm:$0xff] }
  0x6d   : > { %537 = vmatpush.msra.mxu0 %v508_v17  ;;  %566 = vmatpush.msra.mxu1 %v509_v18  ;;  %v500_v25 = vld [vmem:[%s1309_s18 + $0x140] sm:$0xff]  ;;  %v501_v26 = vld [vmem:[%s1309_s18 + $0x148] sm:$0xff]  ;;  %v494_v27 = vld [vmem:[%s1309_s18 + $0x110] sm:$0xff] }
  0x6e   : > { %596 = vmatpush.msra.mxu2 %v506_v14  ;;  %625 = vmatpush.msra.mxu3 %v507_v15  ;;  %v495_v28 = vld [vmem:[%s1309_s18 + $0x118] sm:$0xff]  ;;  %v496_v29 = vld [vmem:[%s1309_s18 + $0x120] sm:$0xff]  ;;  %v497_v30 = vld [vmem:[%s1309_s18 + $0x128] sm:$0xff] }
  0x6f   : > { %538 = vmatpush.msra.mxu0 %v504_v21  ;;  %567 = vmatpush.msra.mxu1 %v505_v22  ;;  %v490_v31 = vld [vmem:[%s1309_s18 + $0xf0] sm:$0xff]  ;;  %v491_v32 = vld [vmem:[%s1309_s18 + $0xf8] sm:$0xff]  ;;  %v492_v33 = vld [vmem:[%s1309_s18 + $0x100] sm:$0xff] }
  0x70   : > { %597 = vmatpush.msra.mxu2 %v502_v19  ;;  %626 = vmatpush.msra.mxu3 %v503_v20  ;;  %v493_v34 = vld [vmem:[%s1309_s18 + $0x108] sm:$0xff]  ;;  %v486_v35 = vld [vmem:[%s1309_s18 + $0xd0] sm:$0xff]  ;;  %v487_v36 = vld [vmem:[%s1309_s18 + $0xd8] sm:$0xff] }
  0x71   : > { %539 = vmatpush.msra.mxu0 %v500_v25  ;;  %568 = vmatpush.msra.mxu1 %v501_v26  ;;  %v488_v37 = vld [vmem:[%s1309_s18 + $0xe0] sm:$0xff]  ;;  %v489_v38 = vld [vmem:[%s1309_s18 + $0xe8] sm:$0xff]  ;;  %v482_v39 = vld [vmem:[%s1309_s18 + $0xb0] sm:$0xff] }
  0x72   : > { %598 = vmatpush.msra.mxu2 %v498_v23  ;;  %627 = vmatpush.msra.mxu3 %v499_v24  ;;  %v483_v40 = vld [vmem:[%s1309_s18 + $0xb8] sm:$0xff]  ;;  %v484_v41 = vld [vmem:[%s1309_s18 + $0xc0] sm:$0xff]  ;;  %v485_v42 = vld [vmem:[%s1309_s18 + $0xc8] sm:$0xff] }
  0x73   : > { %540 = vmatpush.msra.mxu0 %v496_v29  ;;  %569 = vmatpush.msra.mxu1 %v497_v30  ;;  %v478_v43 = vld [vmem:[%s1309_s18 + $0x90] sm:$0xff]  ;;  %v479_v44 = vld [vmem:[%s1309_s18 + $0x98] sm:$0xff]  ;;  %v480_v45 = vld [vmem:[%s1309_s18 + $0xa0] sm:$0xff] }
  0x74   : > { %599 = vmatpush.msra.mxu2 %v494_v27  ;;  %628 = vmatpush.msra.mxu3 %v495_v28  ;;  %v481_v46 = vld [vmem:[%s1309_s18 + $0xa8] sm:$0xff]  ;;  %v474_v47 = vld [vmem:[%s1309_s18 + $0x70] sm:$0xff]  ;;  %v475_v48 = vld [vmem:[%s1309_s18 + $0x78] sm:$0xff] }
  0x75   : > { %541 = vmatpush.msra.mxu0 %v492_v33  ;;  %570 = vmatpush.msra.mxu1 %v493_v34  ;;  %v476_v49 = vld [vmem:[%s1309_s18 + $0x80] sm:$0xff]  ;;  %v477_v50 = vld [vmem:[%s1309_s18 + $0x88] sm:$0xff]  ;;  %v470_v51 = vld [vmem:[%s1309_s18 + $0x50] sm:$0xff] }
  0x76   : > { %600 = vmatpush.msra.mxu2 %v490_v31  ;;  %629 = vmatpush.msra.mxu3 %v491_v32  ;;  %v471_v52 = vld [vmem:[%s1309_s18 + $0x58] sm:$0xff]  ;;  %v472_v53 = vld [vmem:[%s1309_s18 + $0x60] sm:$0xff]  ;;  %v473_v54 = vld [vmem:[%s1309_s18 + $0x68] sm:$0xff] }
  0x77   : > { %542 = vmatpush.msra.mxu0 %v488_v37  ;;  %571 = vmatpush.msra.mxu1 %v489_v38  ;;  %v466_v55 = vld [vmem:[%s1309_s18 + $0x30] sm:$0xff]  ;;  %v467_v56 = vld [vmem:[%s1309_s18 + $0x38] sm:$0xff]  ;;  %v468_v57 = vld [vmem:[%s1309_s18 + $0x40] sm:$0xff] }
  0x78   : > { %601 = vmatpush.msra.mxu2 %v486_v35  ;;  %630 = vmatpush.msra.mxu3 %v487_v36  ;;  %v469_v58 = vld [vmem:[%s1309_s18 + $0x48] sm:$0xff]  ;;  %v462_v59 = vld [vmem:[%s1309_s18 + $0x10] sm:$0xff]  ;;  %v463_v60 = vld [vmem:[%s1309_s18 + $0x18] sm:$0xff] }
  0x79   : > { %543 = vmatpush.msra.mxu0 %v484_v41  ;;  %572 = vmatpush.msra.mxu1 %v485_v42  ;;  %v456_v61 = vld [vmem:[%s1488_s0] sm:$0xff]  ;;  %v465_v63 = vld [vmem:[%s1309_s18 + $0x28] sm:$0xff]  ;;  %v717_v0 = vld [vmem:[%s1307_s25 + $0x178] sm:$0xff] }
  0x7a   : > { %602 = vmatpush.msra.mxu2 %v482_v39  ;;  %631 = vmatpush.msra.mxu3 %v483_v40  ;;  %v464_v62 = vld [vmem:[%s1309_s18 + $0x20] sm:$0xff]  ;;  %v733_v1 = vld [vmem:[%s1307_s25 + $0x1f8] sm:$0xff]  ;;  %v461_v3 = vld [vmem:[%s1309_s18 + $0x8] sm:$0xff] }
  0x7b   : > { %544 = vmatpush.msra.mxu0 %v480_v45  ;;  %573 = vmatpush.msra.mxu1 %v481_v46  ;;  %v460_v2 = vld [vmem:[%s1309_s18] sm:$0xff]  ;;  %v716_v4 = vld [vmem:[%s1307_s25 + $0x170] sm:$0xff]  ;;  %v685_v5 = vld [vmem:[%s1307_s25 + $0x78] sm:$0xff] }
  0x7c   : > { %603 = vmatpush.msra.mxu2 %v478_v43  ;;  %632 = vmatpush.msra.mxu3 %v479_v44  ;;  %v701_v6 = vld [vmem:[%s1307_s25 + $0xf8] sm:$0xff]  ;;  %v732_v7 = vld [vmem:[%s1307_s25 + $0x1f0] sm:$0xff]  ;;  %v715_v8 = vld [vmem:[%s1307_s25 + $0x168] sm:$0xff] }
  0x7d   : > { %545 = vmatpush.msra.mxu0 %v476_v49  ;;  %574 = vmatpush.msra.mxu1 %v477_v50  ;;  %v684_v9 = vld [vmem:[%s1307_s25 + $0x70] sm:$0xff]  ;;  %v457_v10 = vld [vmem:[%s1488_s0 + $0x8] sm:$0xff]  ;;  %v714_v12 = vld [vmem:[%s1307_s25 + $0x160] sm:$0xff] }
  0x7e   : > { %604 = vmatpush.msra.mxu2 %v474_v47  ;;  %633 = vmatpush.msra.mxu3 %v475_v48  ;;  %v700_v11 = vld [vmem:[%s1307_s25 + $0xf0] sm:$0xff]  ;;  %v731_v13 = vld [vmem:[%s1307_s25 + $0x1e8] sm:$0xff]  ;;  %v713_v16 = vld [vmem:[%s1307_s25 + $0x158] sm:$0xff] }
  0x7f   : > { %546 = vmatpush.msra.mxu0 %v472_v53  ;;  %575 = vmatpush.msra.mxu1 %v473_v54  ;;  %v683_v14 = vld [vmem:[%s1307_s25 + $0x68] sm:$0xff]  ;;  %v730_v17 = vld [vmem:[%s1307_s25 + $0x1e0] sm:$0xff]  ;;  %v712_v20 = vld [vmem:[%s1307_s25 + $0x150] sm:$0xff] }
  0x80   : > { %605 = vmatpush.msra.mxu2 %v470_v51  ;;  %634 = vmatpush.msra.mxu3 %v471_v52  ;;  %v699_v15 = vld [vmem:[%s1307_s25 + $0xe8] sm:$0xff]  ;;  %v682_v18 = vld [vmem:[%s1307_s25 + $0x60] sm:$0xff]  ;;  %v729_v21 = vld [vmem:[%s1307_s25 + $0x1d8] sm:$0xff] }
  0x81   : > { %547 = vmatpush.msra.mxu0 %v468_v57  ;;  %576 = vmatpush.msra.mxu1 %v469_v58  ;;  %v698_v19 = vld [vmem:[%s1307_s25 + $0xe0] sm:$0xff]  ;;  %v681_v22 = vld [vmem:[%s1307_s25 + $0x58] sm:$0xff]  ;;  %v458_v23 = vld [vmem:[%s1488_s0 + $0x10] sm:$0xff] }
  0x82   : > { %606 = vmatpush.msra.mxu2 %v466_v55  ;;  %635 = vmatpush.msra.mxu3 %v467_v56  ;;  %v697_v24 = vld [vmem:[%s1307_s25 + $0xd8] sm:$0xff]  ;;  %v711_v25 = vld [vmem:[%s1307_s25 + $0x148] sm:$0xff]  ;;  %v728_v26 = vld [vmem:[%s1307_s25 + $0x1d0] sm:$0xff] }
  0x83   : > { %548 = vmatpush.msra.mxu0 %v464_v62  ;;  %577 = vmatpush.msra.mxu1 %v465_v63  ;;  %v680_v27 = vld [vmem:[%s1307_s25 + $0x50] sm:$0xff]  ;;  %v710_v29 = vld [vmem:[%s1307_s25 + $0x140] sm:$0xff]  ;;  %v727_v30 = vld [vmem:[%s1307_s25 + $0x1c8] sm:$0xff] }
  0x84   : > { %607 = vmatpush.msra.mxu2 %v462_v59  ;;  %636 = vmatpush.msra.mxu3 %v463_v60  ;;  %v696_v28 = vld [vmem:[%s1307_s25 + $0xd0] sm:$0xff]  ;;  %v679_v31 = vld [vmem:[%s1307_s25 + $0x48] sm:$0xff]  ;;  %v709_v33 = vld [vmem:[%s1307_s25 + $0x138] sm:$0xff] }
  0x85   : > { %608 = vmatmul.f32.vlgmr.msra.gmra.mxu2 %v456_v61  ;;  %637 = vmatmul.f32.vlgmr.msra.gmra.mxu3 %v456_v61  ;;  %v695_v32 = vld [vmem:[%s1307_s25 + $0xc8] sm:$0xff]  ;;  %v726_v34 = vld [vmem:[%s1307_s25 + $0x1c0] sm:$0xff]  ;;  %v459_v36 = vld [vmem:[%s1488_s0 + $0x18] sm:$0xff] }
  0x86   : > { %792 = vmatpush.msrb.mxu2 %v717_v0  ;;  %821 = vmatpush.msrb.mxu3 %v733_v1  ;;  %v678_v35 = vld [vmem:[%s1307_s25 + $0x40] sm:$0xff]  ;;  %v708_v38 = vld [vmem:[%s1307_s25 + $0x130] sm:$0xff]  ;;  %v725_v39 = vld [vmem:[%s1307_s25 + $0x1b8] sm:$0xff] }
  0x87   : > { %549 = vmatpush.msra.mxu0 %v460_v2  ;;  %578 = vmatpush.msra.mxu1 %v461_v3  ;;  %v694_v37 = vld [vmem:[%s1307_s25 + $0xc0] sm:$0xff]  ;;  %v677_v40 = vld [vmem:[%s1307_s25 + $0x38] sm:$0xff]  ;;  %v707_v42 = vld [vmem:[%s1307_s25 + $0x128] sm:$0xff] }
  0x88   : > { %550 = vmatmul.f32.vlgmr.msra.gmra.mxu0 %v456_v61  ;;  %579 = vmatmul.f32.vlgmr.msra.gmra.mxu1 %v456_v61  ;;  %v693_v41 = vld [vmem:[%s1307_s25 + $0xb8] sm:$0xff]  ;;  %v724_v43 = vld [vmem:[%s1307_s25 + $0x1b0] sm:$0xff]  ;;  %v706_v46 = vld [vmem:[%s1307_s25 + $0x120] sm:$0xff] }
  0x89   : > { %793 = vmatpush.msrb.mxu2 %v716_v4  ;;  %734 = vmatpush.msrb.mxu0 %v685_v5  ;;  %v676_v44 = vld [vmem:[%s1307_s25 + $0x30] sm:$0xff]  ;;  %v723_v47 = vld [vmem:[%s1307_s25 + $0x1a8] sm:$0xff]  ;;  %v705_v50 = vld [vmem:[%s1307_s25 + $0x118] sm:$0xff] }
  0x8a   : > { %763 = vmatpush.msrb.mxu1 %v701_v6  ;;  %822 = vmatpush.msrb.mxu3 %v732_v7  ;;  %v692_v45 = vld [vmem:[%s1307_s25 + $0xb0] sm:$0xff]  ;;  %v675_v48 = vld [vmem:[%s1307_s25 + $0x28] sm:$0xff]  ;;  %v722_v51 = vld [vmem:[%s1307_s25 + $0x1a0] sm:$0xff] }
  0x8b   : > { %794 = vmatpush.msrb.mxu2 %v715_v8  ;;  %735 = vmatpush.msrb.mxu0 %v684_v9  ;;  %v691_v49 = vld [vmem:[%s1307_s25 + $0xa8] sm:$0xff]  ;;  %v674_v52 = vld [vmem:[%s1307_s25 + $0x20] sm:$0xff]  ;;  %v704_v54 = vld [vmem:[%s1307_s25 + $0x110] sm:$0xff] }
  0x8c   : > { %764 = vmatpush.msrb.mxu1 %v700_v11  ;;  %823 = vmatpush.msrb.mxu3 %v731_v13  ;;  %v690_v53 = vld [vmem:[%s1307_s25 + $0xa0] sm:$0xff]  ;;  %v721_v55 = vld [vmem:[%s1307_s25 + $0x198] sm:$0xff]  ;;  %v703_v58 = vld [vmem:[%s1307_s25 + $0x108] sm:$0xff] }
  0x8d   : > { %611 = vmatmul.f32.gmra.mxu2 %v457_v10  ;;  %640 = vmatmul.f32.gmra.mxu3 %v457_v10  ;;  %v673_v56 = vld [vmem:[%s1307_s25 + $0x18] sm:$0xff]  ;;  %v720_v59 = vld [vmem:[%s1307_s25 + $0x190] sm:$0xff]  ;;  %v702_v62 = vld [vmem:[%s1307_s25 + $0x100] sm:$0xff] }
  0x8e   : > { %795 = vmatpush.msrb.mxu2 %v714_v12  ;;  %736 = vmatpush.msrb.mxu0 %v683_v14  ;;  %v689_v57 = vld [vmem:[%s1307_s25 + $0x98] sm:$0xff]  ;;  %v672_v60 = vld [vmem:[%s1307_s25 + $0x10] sm:$0xff]  ;;  %v719_v63 = vld [vmem:[%s1307_s25 + $0x188] sm:$0xff] }
  0x8f   : > { %765 = vmatpush.msrb.mxu1 %v699_v15  ;;  %824 = vmatpush.msrb.mxu3 %v730_v17  ;;  %v688_v61 = vld [vmem:[%s1307_s25 + $0x90] sm:$0xff]  ;;  %v671_v0 = vld [vmem:[%s1307_s25 + $0x8] sm:$0xff]  ;;  %v718_v2 = vld [vmem:[%s1307_s25 + $0x180] sm:$0xff] }
  0x90   : > { %796 = vmatpush.msrb.mxu2 %v713_v16  ;;  %553 = vmatmul.f32.gmra.mxu0 %v457_v10  ;;  %v687_v1 = vld [vmem:[%s1307_s25 + $0x88] sm:$0xff]  ;;  %v670_v3 = vld [vmem:[%s1307_s25] sm:$0xff] }
  0x91   : > { %582 = vmatmul.f32.gmra.mxu1 %v457_v10  ;;  %737 = vmatpush.msrb.mxu0 %v682_v18  ;;  %v686_v4 = vld [vmem:[%s1307_s25 + $0x80] sm:$0xff] }
  0x92   : > { %766 = vmatpush.msrb.mxu1 %v698_v19  ;;  %797 = vmatpush.msrb.mxu2 %v712_v20  ;;  %v524_v5 = vld [vmem:[%s434_s15] sm:$0xf] }
  0x93   : > { %825 = vmatpush.msrb.mxu3 %v729_v21  ;;  %738 = vmatpush.msrb.mxu0 %v681_v22  ;;  %v526_v6 = vperm.slane %v524_v5, 0  ;;  %v527_v7 = vperm.slane %v524_v5, 1  ;;  %v528_v8 = vperm.slane %v524_v5, 2  ;;  %v529_v9 = vperm.slane %v524_v5, 3 }
  0x94   : > { %767 = vmatpush.msrb.mxu1 %v697_v24  ;;  %798 = vmatpush.msrb.mxu2 %v711_v25 }
  0x95   : > { %614 = vmatmul.f32.gmra.mxu2 %v458_v23  ;;  %643 = vmatmul.f32.gmra.mxu3 %v458_v23 }
  0x96   : > { %826 = vmatpush.msrb.mxu3 %v728_v26  ;;  %739 = vmatpush.msrb.mxu0 %v680_v27 }
  0x97   : > { %768 = vmatpush.msrb.mxu1 %v696_v28  ;;  %799 = vmatpush.msrb.mxu2 %v710_v29 }
  0x98   : > { %556 = vmatmul.f32.gmra.mxu0 %v458_v23  ;;  %827 = vmatpush.msrb.mxu3 %v727_v30 }
  0x99   : > { %585 = vmatmul.f32.gmra.mxu1 %v458_v23  ;;  %740 = vmatpush.msrb.mxu0 %v679_v31 }
  0x9a   : > { %769 = vmatpush.msrb.mxu1 %v695_v32  ;;  %800 = vmatpush.msrb.mxu2 %v709_v33 }
  0x9b   : > { %828 = vmatpush.msrb.mxu3 %v726_v34  ;;  %741 = vmatpush.msrb.mxu0 %v678_v35 }
  0x9c   : > { %770 = vmatpush.msrb.mxu1 %v694_v37  ;;  %801 = vmatpush.msrb.mxu2 %v708_v38 }
  0x9d   : > { %617 = vmatmul.f32.gmra.mxu2 %v459_v36  ;;  %646 = vmatmul.f32.gmra.mxu3 %v459_v36 }
  0x9e   : > { %829 = vmatpush.msrb.mxu3 %v725_v39  ;;  %742 = vmatpush.msrb.mxu0 %v677_v40 }
  0x9f   : > { %771 = vmatpush.msrb.mxu1 %v693_v41  ;;  %802 = vmatpush.msrb.mxu2 %v707_v42 }
  0xa0   : > { %559 = vmatmul.f32.gmra.mxu0 %v459_v36  ;;  %830 = vmatpush.msrb.mxu3 %v724_v43 }
  0xa1   : > { %588 = vmatmul.f32.gmra.mxu1 %v459_v36  ;;  %743 = vmatpush.msrb.mxu0 %v676_v44 }
  0xa2   : > { %772 = vmatpush.msrb.mxu1 %v692_v45  ;;  %803 = vmatpush.msrb.mxu2 %v706_v46 }
  0xa3   : > { %831 = vmatpush.msrb.mxu3 %v723_v47  ;;  %744 = vmatpush.msrb.mxu0 %v675_v48 }
  0xa4   : > { %773 = vmatpush.msrb.mxu1 %v691_v49  ;;  %804 = vmatpush.msrb.mxu2 %v705_v50 }
  0xa5   : > { %832 = vmatpush.msrb.mxu3 %v722_v51  ;;  %745 = vmatpush.msrb.mxu0 %v674_v52 }
  0xa6   : > { %774 = vmatpush.msrb.mxu1 %v690_v53  ;;  %805 = vmatpush.msrb.mxu2 %v704_v54 }
  0xa7   : > { %833 = vmatpush.msrb.mxu3 %v721_v55  ;;  %746 = vmatpush.msrb.mxu0 %v673_v56 }
  0xa8   : > { %775 = vmatpush.msrb.mxu1 %v689_v57  ;;  %806 = vmatpush.msrb.mxu2 %v703_v58 }
  0xa9   : > { %834 = vmatpush.msrb.mxu3 %v720_v59  ;;  %747 = vmatpush.msrb.mxu0 %v672_v60 }
  0xaa   : > { %776 = vmatpush.msrb.mxu1 %v688_v61  ;;  %807 = vmatpush.msrb.mxu2 %v702_v62 }
  0xab   : > { %835 = vmatpush.msrb.mxu3 %v719_v63  ;;  %748 = vmatpush.msrb.mxu0 %v671_v0 }
  0xac   : > { %777 = vmatpush.msrb.mxu1 %v687_v1 }
  0xad   : > { %836 = vmatpush.msrb.mxu3 %v718_v2  ;;  %749 = vmatpush.msrb.mxu0 %v670_v3  ;;  %v666_v2 = vld [vmem:[#allocation2 + $0x10] sm:$0xff] }
  0xae   : > { %778 = vmatpush.msrb.mxu1 %v686_v4 }
 0x105   : > { %v551_v10 = vpop.f32.mrf.mxu0  ;;  %v580_v11 = vpop.f32.mrf.mxu1 }
 0x106   : > { %v552_v12 = vadd.f32 %v551_v10, %v526_v6  ;;  %v581_v13 = vadd.f32 %v580_v11, %v527_v7  ;;  %v667_v11 = vld [vmem:[#allocation2] sm:$0xff] }
 0x108   : > { %v609_v14 = vpop.f32.mrf.mxu2  ;;  %v638_v15 = vpop.f32.mrf.mxu3  ;;  %v650_v18 = vmax.f32 %v552_v12, 0.0  ;;  %v651_v19 = vmax.f32 %v581_v13, 0.0 }
 0x109   : > { %v610_v16 = vadd.f32 %v609_v14, %v528_v8  ;;  %v639_v17 = vadd.f32 %v638_v15, %v529_v9 }
 0x10a   : > { %750 = vmatmul.f32.vlgmr.msrb.gmra.mxu0 %v650_v18  ;;  %779 = vmatmul.f32.vlgmr.msrb.gmra.mxu1 %v651_v19  ;;  %v668_v18 = vld [vmem:[#allocation2 + $0x18] sm:$0xff] }
 0x10b   : > { %v652_v20 = vmax.f32 %v610_v16, 0.0  ;;  %v653_v21 = vmax.f32 %v639_v17, 0.0 }
 0x10d   : > { %808 = vmatmul.f32.vlgmr.msrb.gmra.mxu2 %v652_v20  ;;  %837 = vmatmul.f32.vlgmr.msrb.gmra.mxu3 %v653_v21  ;;  %v554_v22 = vpop.f32.mrf.mxu0 }
 0x10e   : > { %v583_v23 = vpop.f32.mrf.mxu1  ;;  %v555_v24 = vadd.f32 %v554_v22, %v526_v6 }
 0x10f   : > { %v584_v25 = vadd.f32 %v583_v23, %v527_v7 }
 0x110   : > { %v612_v26 = vpop.f32.mrf.mxu2  ;;  %v641_v27 = vpop.f32.mrf.mxu3  ;;  %v654_v30 = vmax.f32 %v555_v24, 0.0 }
 0x111   : > { %v613_v28 = vadd.f32 %v612_v26, %v528_v8  ;;  %v642_v29 = vadd.f32 %v641_v27, %v529_v9  ;;  %v655_v31 = vmax.f32 %v584_v25, 0.0  ;;  %v669_v27 = vld [vmem:[#allocation2 + $0x8] sm:$0xff] }
 0x112   : > { %753 = vmatmul.f32.gmra.mxu0 %v654_v30 }
 0x113   : > { %v656_v32 = vmax.f32 %v613_v28, 0.0  ;;  %v657_v33 = vmax.f32 %v642_v29, 0.0  ;;  %782 = vmatmul.f32.gmra.mxu1 %v655_v31 }
 0x115   : > { %811 = vmatmul.f32.gmra.mxu2 %v656_v32  ;;  %840 = vmatmul.f32.gmra.mxu3 %v657_v33  ;;  %v557_v34 = vpop.f32.mrf.mxu0 }
 0x116   : > { %v586_v35 = vpop.f32.mrf.mxu1  ;;  %v558_v36 = vadd.f32 %v557_v34, %v526_v6 }
 0x117   : > { %v587_v37 = vadd.f32 %v586_v35, %v527_v7 }
 0x118   : > { %v615_v38 = vpop.f32.mrf.mxu2  ;;  %v644_v39 = vpop.f32.mrf.mxu3  ;;  %v658_v42 = vmax.f32 %v558_v36, 0.0 }
 0x119   : > { %v616_v40 = vadd.f32 %v615_v38, %v528_v8  ;;  %v645_v41 = vadd.f32 %v644_v39, %v529_v9  ;;  %v659_v43 = vmax.f32 %v587_v37, 0.0 }
 0x11a   : > { %756 = vmatmul.f32.gmra.mxu0 %v658_v42 }
 0x11b   : > { %v660_v44 = vmax.f32 %v616_v40, 0.0  ;;  %v661_v45 = vmax.f32 %v645_v41, 0.0  ;;  %785 = vmatmul.f32.gmra.mxu1 %v659_v43 }
 0x11d   : > { %814 = vmatmul.f32.gmra.mxu2 %v660_v44  ;;  %843 = vmatmul.f32.gmra.mxu3 %v661_v45  ;;  %v560_v46 = vpop.f32.mrf.mxu0 }
 0x11e   : > { %v589_v47 = vpop.f32.mrf.mxu1  ;;  %v561_v48 = vadd.f32 %v560_v46, %v526_v6 }
 0x11f   : > { %v590_v49 = vadd.f32 %v589_v47, %v527_v7 }
 0x120   : > { %v618_v50 = vpop.f32.mrf.mxu2  ;;  %v647_v51 = vpop.f32.mrf.mxu3  ;;  %v662_v54 = vmax.f32 %v561_v48, 0.0 }
 0x121   : > { %v619_v52 = vadd.f32 %v618_v50, %v528_v8  ;;  %v648_v53 = vadd.f32 %v647_v51, %v529_v9  ;;  %v663_v55 = vmax.f32 %v590_v49, 0.0 }
 0x122   : > { %759 = vmatmul.f32.gmra.mxu0 %v662_v54 }
 0x123   : > { %v664_v56 = vmax.f32 %v619_v52, 0.0  ;;  %v665_v57 = vmax.f32 %v648_v53, 0.0  ;;  %788 = vmatmul.f32.gmra.mxu1 %v663_v55 }
 0x125   : > { %817 = vmatmul.f32.gmra.mxu2 %v664_v56  ;;  %846 = vmatmul.f32.gmra.mxu3 %v665_v57 }
 0x187   : > { %v751_v58 = vpop.f32.mrf.mxu0  ;;  %v780_v59 = vpop.f32.mrf.mxu1 }
 0x188   : > { %v781_v60 = vadd.f32 %v780_v59, %v751_v58 }
 0x18f   : > { %v754_v0 = vpop.f32.mrf.mxu0 }
 0x190   : > { %v809_v61 = vpop.f32.mrf.mxu2  ;;  %v838_v62 = vpop.f32.mrf.mxu3 }
 0x191   : > { %v810_v63 = vadd.f32 %v809_v61, %v781_v60  ;;  %v783_v1 = vpop.f32.mrf.mxu1 }
 0x192   : > { %v784_v5 = vadd.f32 %v783_v1, %v754_v0 }
 0x193   : > { %v839_v3 = vadd.f32 %v838_v62, %v810_v63 }
 0x195   : > { %v850_v4 = vadd.f32 %v839_v3, %v666_v2 }
 0x197   : > { %854 = vst [vmem:[#allocation2 + $0x10] sm:$0xff] %v850_v4  ;;  %v757_v9 = vpop.f32.mrf.mxu0 }
 0x198   : > { %v812_v6 = vpop.f32.mrf.mxu2  ;;  %v841_v7 = vpop.f32.mrf.mxu3 }
 0x199   : > { %v813_v8 = vadd.f32 %v812_v6, %v784_v5  ;;  %v786_v10 = vpop.f32.mrf.mxu1 }
 0x19a   : > { %v787_v14 = vadd.f32 %v786_v10, %v757_v9 }
 0x19b   : > { %v842_v12 = vadd.f32 %v841_v7, %v813_v8 }
 0x19d   : > { %v851_v13 = vadd.f32 %v842_v12, %v667_v11 }
 0x19f   : > { %855 = vst [vmem:[#allocation2] sm:$0xff] %v851_v13  ;;  %v760_v19 = vpop.f32.mrf.mxu0 }
 0x1a0   : > { %v815_v15 = vpop.f32.mrf.mxu2  ;;  %v844_v16 = vpop.f32.mrf.mxu3 }
 0x1a1   : > { %v816_v17 = vadd.f32 %v815_v15, %v787_v14  ;;  %v789_v20 = vpop.f32.mrf.mxu1 }
 0x1a2   : > { %v790_v23 = vadd.f32 %v789_v20, %v760_v19 }
 0x1a3   : > { %v845_v21 = vadd.f32 %v844_v16, %v816_v17 }
 0x1a5   : > { %v852_v22 = vadd.f32 %v845_v21, %v668_v18 }
 0x1a7   : > { %856 = vst [vmem:[#allocation2 + $0x18] sm:$0xff] %v852_v22 }
 0x1a8   : > { %v818_v24 = vpop.f32.mrf.mxu2  ;;  %v847_v25 = vpop.f32.mrf.mxu3 }
 0x1a9   : > { %v819_v26 = vadd.f32 %v818_v24, %v790_v23 }
 0x1ab   : > { %v848_v28 = vadd.f32 %v847_v25, %v819_v26  ;;  %861 = sbr.rel (%p999_p12) target bundleno = 444 (0x1bc), region = 71 }
 0x1ad   : > { %v853_v29 = vadd.f32 %v848_v28, %v669_v27 }
 0x1af   : > { %857 = vst [vmem:[#allocation2 + $0x8] sm:$0xff] %v853_v29 }
 0x1b0   : > { %v862_v30 = vld [vmem:[#allocation2 + $0x10] sm:$0xff]  ;;  %v1046_v31 = vld [vmem:[%s1492_s4] ss:$0 sm:$0xff]  ;;  %v864_v33 = vld [vmem:[#allocation2 + $0x18] sm:$0xff] }
 0x1b1   : > { %v863_v32 = vld [vmem:[#allocation2] sm:$0xff]  ;;  %v870_v35 = vadd.f32 %v1046_v31, %v862_v30  ;;  %v872_v37 = vadd.f32 %v1046_v31, %v864_v33 }
 0x1b2   : > { %v871_v36 = vadd.f32 %v1046_v31, %v863_v32 }
 0x1b3   : > { %v874_v39 = vmax.f32 %v870_v35, 0.0  ;;  %v876_v41 = vmax.f32 %v872_v37, 0.0 }
 0x1b4   : > { %v875_v40 = vmax.f32 %v871_v36, 0.0 }
 0x1b5   : > { %878 = vst [vmem:[%s1493_s5] sm:$0xff] %v874_v39 }
 0x1b6   : > { %v865_v34 = vld [vmem:[#allocation2 + $0x8] sm:$0xff]  ;;  %879 = vst [vmem:[%s1493_s5 + $0x8] sm:$0xff] %v875_v40 }
 0x1b7   : > { %v873_v38 = vadd.f32 %v1046_v31, %v865_v34  ;;  %880 = vst [vmem:[%s1493_s5 + $0x10] sm:$0xff] %v876_v41 }
 0x1b9   : > { %v877_v42 = vmax.f32 %v873_v38, 0.0 }
 0x1bb   : > { %881 = vst [vmem:[%s1493_s5 + $0x18] sm:$0xff] %v877_v42 }
 0x1bc PF: > { %s15_s22 = sadd.s32 1, %s1085_s22   ;;  %s1494_s18 = smov %s1073_s19 }
 0x1bd   : > { %p12_p13 = scmp.ge.s32.totalorder %s15_s22, 4   ;;  %s1495_s19 = smov %s1153_s26 }
 0x1be   : > { %s1496_s20 = smov %s1081_s21  ;;  %s1497_s21 = smov %s1499_s23 }
 0x1bf   :  { %14 = sbr.rel (!%p12_p13) target bundleno = 3 (0x3), region = 115 }

</bundles_post_ra>
